<compile_context>
chip_gen: v6e
topology: v6e:2x2x1
jax: 0.10.0
libtpu: 0.0.40
codegen_flags: <defaults>
</compile_context>

<pallas_src>
import functools

import jax
import jax.numpy as jnp
from jax.experimental import pallas as pl
from jax.experimental.pallas import tpu as pltpu


def gru_linear_kernel(x_ref, wi_ref, wh_ref, bi_ref, bhn_ref, wlin_ref, blin_ref,
                      out_ref, gi_ref, hs_ref, *, seq_len, batch, hp):
    """GRU recurrence + Linear, single invocation.

    Refs:
      x_ref    : (T*B, Ip)    bf16   time-major flattened input (zero-padded features)
      wi_ref   : (Ip, 3*Hp)   bf16   fused input->gate weights  [r | z | n], gate-padded
      wh_ref   : (Hp, 3*Hp)   bf16   fused hidden->gate weights [r | z | n], gate-padded
      bi_ref   : (1, 3*Hp)    f32    [b_ir+b_hr | b_iz+b_hz | b_in] (padded with zeros)
      bhn_ref  : (1, Hp)      f32    b_hn (kept separate: gated by r)
      wlin_ref : (Hp, O)      bf16   final Linear weight (padded rows are zero)
      blin_ref : (1, O)       f32
      out_ref  : (T*B, O)     f32    time-major flattened output
      gi_ref   : (T*B, 3*Hp)  f32    scratch: precomputed input-gate activations
      hs_ref   : (T*B, Hp)    f32    scratch: hidden-state trajectory
    """
    f32 = jnp.float32
    bf16 = jnp.bfloat16

    # (1) Hoisted input projection: one big MXU matmul, input/combined biases
    #     folded in.  Removes 3 matmuls per timestep from the serial chain and
    #     raises the matmul M-dim from B to T*B.
    gi_ref[...] = (
        jnp.dot(x_ref[...], wi_ref[...], preferred_element_type=f32)
        + bi_ref[...])

    # Hoist loop-invariant reads / broadcasts (JAX does not CSE broadcasts).
    wh = wh_ref[...]                                      # (Hp, 3*Hp) bf16
    bhn = jnp.broadcast_to(bhn_ref[...], (batch, hp))     # (B, Hp) f32

    h = jnp.zeros((batch, hp), f32)

    # (2) Fully unrolled time loop (seq_len is small & static) -> static slice
    #     indices and full LLO scheduler visibility across steps.  One fused,
    #     gate-padded bf16 matmul per step on the recurrence critical path.
    #     Padded hidden columns (>= H) stay exactly zero: their gi/gh/bias
    #     entries are zero, so n=0 there and h_new = 0.5 * 0 = 0.
    for t in range(seq_len):
        lo = t * batch
        gi_t = gi_ref[lo:lo + batch, :]                   # (B, 3*Hp) f32
        gh = jnp.dot(h.astype(bf16), wh, preferred_element_type=f32)
        r = jax.nn.sigmoid(gi_t[:, 0:hp] + gh[:, 0:hp])
        z = jax.nn.sigmoid(gi_t[:, hp:2 * hp] + gh[:, hp:2 * hp])
        n = jnp.tanh(gi_t[:, 2 * hp:3 * hp] + r * (gh[:, 2 * hp:3 * hp] + bhn))
        h = (1.0 - z) * n + z * h                         # f32 gate math
        hs_ref[lo:lo + batch, :] = h                      # lane-dense 128-wide store

    # (3) Single trailing Linear over the whole trajectory + ONE output store
    #     (instead of T per-step lane-width-1 masked stores).
    out_ref[...] = (
        jnp.dot(hs_ref[...].astype(bf16), wlin_ref[...],
                preferred_element_type=f32)
        + blin_ref[...])


def _round_up(x, m):
    return ((x + m - 1) // m) * m


@functools.partial(jax.jit, static_argnames=("hidden_size",))
def rnn_block_forward(x, params, *, hidden_size):
    """x: (B, T, I) float32 (PyTorch batch_first). Returns (B, T, O)."""
    B, T, I = x.shape
    H = hidden_size
    w_ih, w_hh = params["w_ih"], params["w_hh"]        # (3H, I), (3H, H)
    b_ih, b_hh = params["b_ih"], params["b_hh"]        # (3H,), (3H,)
    w_lin, b_lin = params["w_lin"], params["b_lin"]    # (O, H), (O,)
    O = w_lin.shape[0]

    f32, bf16 = jnp.float32, jnp.bfloat16
    Hp = _round_up(H, 128)     # pad each gate to a full lane tile
    Ip = _round_up(I, 128)

    # PyTorch GRU gate order: [r, z, n].  Build fused, transposed, padded weights.
    def gate_w(w, k_pad):      # w: (H, K) gate block -> (K_pad, Hp) = w.T zero-padded
        return jnp.pad(w.T.astype(f32), ((0, k_pad - w.shape[1]), (0, Hp - H)))

    wi_pad = jnp.concatenate(
        [gate_w(w_ih[g * H:(g + 1) * H], Ip) for g in range(3)], axis=1).astype(bf16)
    wh_pad = jnp.concatenate(
        [gate_w(w_hh[g * H:(g + 1) * H], Hp) for g in range(3)], axis=1).astype(bf16)
    wlin_pad = jnp.pad(w_lin.T.astype(f32), ((0, Hp - H), (0, 0))).astype(bf16)

    def pad_h(v):
        return jnp.pad(v.astype(f32), (0, Hp - H))

    bi_pad = jnp.concatenate([
        pad_h(b_ih[0:H] + b_hh[0:H]),            # r: b_ir + b_hr
        pad_h(b_ih[H:2 * H] + b_hh[H:2 * H]),    # z: b_iz + b_hz
        pad_h(b_ih[2 * H:3 * H]),                # n: b_in (b_hn kept separate)
    ]).reshape(1, 3 * Hp)
    bhn_pad = pad_h(b_hh[2 * H:3 * H]).reshape(1, Hp)
    blin = b_lin.astype(f32).reshape(1, O)

    # Time-major flattened, feature-padded, bf16 input.
    x_tm = jnp.transpose(x, (1, 0, 2)).reshape(T * B, I)
    x_tm = jnp.pad(x_tm.astype(f32), ((0, 0), (0, Ip - I))).astype(bf16)

    vmem = pl.BlockSpec(memory_space=pltpu.MemorySpace.VMEM)
    out_flat = pl.pallas_call(
        functools.partial(gru_linear_kernel, seq_len=T, batch=B, hp=Hp),
        out_shape=jax.ShapeDtypeStruct((T * B, O), jnp.float32),
        in_specs=[vmem] * 7,
        out_specs=vmem,
        scratch_shapes=[pltpu.VMEM((T * B, 3 * Hp), jnp.float32),   # gi
                        pltpu.VMEM((T * B, Hp), jnp.float32)],      # hs
    )(x_tm, wi_pad, wh_pad, bi_pad, bhn_pad, wlin_pad, blin)

    return jnp.transpose(out_flat.reshape(T, B, O), (1, 0, 2))      # (B, T, O)


def rnn_block_reference(x, params, *, hidden_size):
    """Pure-JAX reference matching PyTorch GRU + Linear semantics, using the
    same matmul precision as the kernel (bf16 operands, f32 accumulate)."""
    H = hidden_size
    w_ih = params["w_ih"].astype(jnp.bfloat16)
    w_hh = params["w_hh"].astype(jnp.bfloat16)
    b_ih, b_hh = params["b_ih"], params["b_hh"]
    w_lin = params["w_lin"].astype(jnp.bfloat16)
    b_lin = params["b_lin"]
    B, T, I = x.shape
    xb = x.astype(jnp.bfloat16)

    def step(h, x_t):
        gi = jnp.dot(x_t, w_ih.T, preferred_element_type=jnp.float32) + b_ih
        gh = jnp.dot(h.astype(jnp.bfloat16), w_hh.T,
                     preferred_element_type=jnp.float32) + b_hh
        r = jax.nn.sigmoid(gi[:, 0:H] + gh[:, 0:H])
        z = jax.nn.sigmoid(gi[:, H:2 * H] + gh[:, H:2 * H])
        n = jnp.tanh(gi[:, 2 * H:3 * H] + r * gh[:, 2 * H:3 * H])
        h_new = (1.0 - z) * n + z * h
        return h_new, h_new

    h0 = jnp.zeros((B, H), jnp.float32)
    _, hs = jax.lax.scan(step, h0, jnp.transpose(xb, (1, 0, 2)))   # (T, B, H)
    hs = jnp.transpose(hs, (1, 0, 2))                              # (B, T, H)
    return (jnp.dot(hs.astype(jnp.bfloat16), w_lin.T,
                    preferred_element_type=jnp.float32) + b_lin)


def init_params(key, input_size, hidden_size, output_size):
    """Deterministic PyTorch-style uniform(-1/sqrt(H), 1/sqrt(H)) init."""
    k = 1.0 / jnp.sqrt(jnp.float32(hidden_size))
    keys = jax.random.split(key, 6)
    u = lambda kk, shape: jax.random.uniform(kk, shape, jnp.float32, -k, k)
    return {
        "w_ih": u(keys[0], (3 * hidden_size, input_size)),
        "w_hh": u(keys[1], (3 * hidden_size, hidden_size)),
        "b_ih": u(keys[2], (3 * hidden_size,)),
        "b_hh": u(keys[3], (3 * hidden_size,)),
        "w_lin": u(keys[4], (output_size, hidden_size)),
        "b_lin": u(keys[5], (output_size,)),
    }


if __name__ == "__main__":
    # Module defaults: input_size=57, hidden_size=20, output_size=1, n_layers=1.
    INPUT_SIZE, HIDDEN_SIZE, OUTPUT_SIZE = 57, 20, 1
    BATCH, SEQ = 2, 8

    key = jax.random.PRNGKey(0)
    k_x, k_p = jax.random.split(key)
    x = jax.random.normal(k_x, (BATCH, SEQ, INPUT_SIZE), jnp.float32)
    params = init_params(k_p, INPUT_SIZE, HIDDEN_SIZE, OUTPUT_SIZE)

    out = rnn_block_forward(x, params, hidden_size=HIDDEN_SIZE)
    out = jax.block_until_ready(out)

    assert out.shape == (BATCH, SEQ, OUTPUT_SIZE), out.shape

    ref = rnn_block_reference(x, params, hidden_size=HIDDEN_SIZE)
    max_err = float(jnp.max(jnp.abs(out - ref)))
    assert jnp.allclose(out, ref, atol=2e-2, rtol=2e-2), max_err

    print("KERNEL_OK")
</pallas_src>

<mosaic_0001>
module attributes {stable_mosaic.version = 11 : i64} {
  func.func @gru_linear_kernel(%arg0: memref<16x128xbf16, #tpu.memory_space<vmem>>, %arg1: memref<128x384xbf16, #tpu.memory_space<vmem>>, %arg2: memref<128x384xbf16, #tpu.memory_space<vmem>>, %arg3: memref<1x384xf32, #tpu.memory_space<vmem>>, %arg4: memref<1x128xf32, #tpu.memory_space<vmem>>, %arg5: memref<128x1xbf16, #tpu.memory_space<vmem>>, %arg6: memref<1x1xf32, #tpu.memory_space<vmem>>, %arg7: memref<16x1xf32, #tpu.memory_space<vmem>>, %arg8: memref<16x384xf32, #tpu.memory_space<vmem>>, %arg9: memref<16x128xf32, #tpu.memory_space<vmem>>) attributes {dimension_semantics = [], scalar_prefetch = 0 : i64, scratch_operands = 2 : i64, tpu.core_type = #tpu.core_type<tc>} {
    %c0 = arith.constant 0 : index
    %c0_0 = arith.constant 0 : index
    %0 = vector.load %arg0[%c0, %c0_0] : memref<16x128xbf16, #tpu.memory_space<vmem>>, vector<16x128xbf16>
    %c0_1 = arith.constant 0 : index
    %c0_2 = arith.constant 0 : index
    %1 = vector.load %arg1[%c0_1, %c0_2] : memref<128x384xbf16, #tpu.memory_space<vmem>>, vector<128x384xbf16>
    %cst = arith.constant dense<0.000000e+00> : vector<16x384xf32>
    %2 = tpu.matmul %0, %1, %cst {dimension_numbers = #tpu.dot_dimension_numbers<[1], [0], [0], [1], [0, 0, 1, 1], [], []>} : vector<16x128xbf16>, vector<128x384xbf16>, vector<16x384xf32> -> vector<16x384xf32>
    %c0_3 = arith.constant 0 : index
    %c0_4 = arith.constant 0 : index
    %3 = vector.load %arg3[%c0_3, %c0_4] : memref<1x384xf32, #tpu.memory_space<vmem>>, vector<1x384xf32>
    %4 = vector.broadcast %3 : vector<1x384xf32> to vector<16x384xf32>
    %5 = arith.addf %2, %4 : vector<16x384xf32>
    %c0_5 = arith.constant 0 : index
    %c0_6 = arith.constant 0 : index
    %6 = vector.load %arg8[%c0_5, %c0_6] : memref<16x384xf32, #tpu.memory_space<vmem>>, vector<16x384xf32>
    tpu.vector_store %arg8[%c0_5, %c0_6], %5 {strides = array<i32>} : memref<16x384xf32, #tpu.memory_space<vmem>>, vector<16x384xf32>,
    %c0_7 = arith.constant 0 : index
    %c0_8 = arith.constant 0 : index
    %7 = vector.load %arg2[%c0_7, %c0_8] : memref<128x384xbf16, #tpu.memory_space<vmem>>, vector<128x384xbf16>
    %c0_9 = arith.constant 0 : index
    %c0_10 = arith.constant 0 : index
    %8 = vector.load %arg4[%c0_9, %c0_10] : memref<1x128xf32, #tpu.memory_space<vmem>>, vector<1x128xf32>
    %9 = vector.shape_cast %8 : vector<1x128xf32> to vector<1x128xf32>
    %10 = vector.broadcast %9 : vector<1x128xf32> to vector<2x128xf32>
    %cst_11 = arith.constant 0.000000e+00 : f32
    %11 = vector.broadcast %cst_11 : f32 to vector<2x128xf32>
    %c0_12 = arith.constant 0 : index
    %c0_13 = arith.constant 0 : index
    %12 = vector.load %arg8[%c0_12, %c0_13] : memref<16x384xf32, #tpu.memory_space<vmem>>, vector<2x384xf32>
    %13 = arith.truncf %11 : vector<2x128xf32> to vector<2x128xbf16>
    %cst_14 = arith.constant dense<0.000000e+00> : vector<2x384xf32>
    %14 = tpu.matmul %13, %7, %cst_14 {dimension_numbers = #tpu.dot_dimension_numbers<[1], [0], [0], [1], [0, 0, 1, 1], [], []>} : vector<2x128xbf16>, vector<128x384xbf16>, vector<2x384xf32> -> vector<2x384xf32>
    %15 = vector.extract_strided_slice %12 {offsets = [0, 0], sizes = [2, 128], strides = [1, 1]} : vector<2x384xf32> to vector<2x128xf32>
    %16 = vector.extract_strided_slice %14 {offsets = [0, 0], sizes = [2, 128], strides = [1, 1]} : vector<2x384xf32> to vector<2x128xf32>
    %17 = arith.addf %15, %16 : vector<2x128xf32>
    %18 = arith.negf %17 : vector<2x128xf32>
    %19 = math.exp %18 : vector<2x128xf32>
    %cst_15 = arith.constant 1.000000e+00 : f32
    %20 = vector.broadcast %cst_15 : f32 to vector<2x128xf32>
    %21 = arith.addf %20, %19 : vector<2x128xf32>
    %22 = arith.divf %20, %21 : vector<2x128xf32>
    %23 = vector.extract_strided_slice %12 {offsets = [0, 128], sizes = [2, 128], strides = [1, 1]} : vector<2x384xf32> to vector<2x128xf32>
    %24 = vector.extract_strided_slice %14 {offsets = [0, 128], sizes = [2, 128], strides = [1, 1]} : vector<2x384xf32> to vector<2x128xf32>
    %25 = arith.addf %23, %24 : vector<2x128xf32>
    %26 = arith.negf %25 : vector<2x128xf32>
    %27 = math.exp %26 : vector<2x128xf32>
    %cst_16 = arith.constant 1.000000e+00 : f32
    %28 = vector.broadcast %cst_16 : f32 to vector<2x128xf32>
    %29 = arith.addf %28, %27 : vector<2x128xf32>
    %30 = arith.divf %28, %29 : vector<2x128xf32>
    %31 = vector.extract_strided_slice %12 {offsets = [0, 256], sizes = [2, 128], strides = [1, 1]} : vector<2x384xf32> to vector<2x128xf32>
    %32 = vector.extract_strided_slice %14 {offsets = [0, 256], sizes = [2, 128], strides = [1, 1]} : vector<2x384xf32> to vector<2x128xf32>
    %33 = arith.addf %32, %10 : vector<2x128xf32>
    %34 = arith.mulf %22, %33 : vector<2x128xf32>
    %35 = arith.addf %31, %34 : vector<2x128xf32>
    %36 = math.tanh %35 : vector<2x128xf32>
    %cst_17 = arith.constant 1.000000e+00 : f32
    %37 = vector.broadcast %cst_17 : f32 to vector<2x128xf32>
    %38 = arith.subf %37, %30 : vector<2x128xf32>
    %39 = arith.mulf %38, %36 : vector<2x128xf32>
    %40 = arith.mulf %30, %11 : vector<2x128xf32>
    %41 = arith.addf %39, %40 : vector<2x128xf32>
    %c0_18 = arith.constant 0 : index
    %c0_19 = arith.constant 0 : index
    %42 = vector.load %arg9[%c0_18, %c0_19] : memref<16x128xf32, #tpu.memory_space<vmem>>, vector<2x128xf32>
    tpu.vector_store %arg9[%c0_18, %c0_19], %41 {strides = array<i32>} : memref<16x128xf32, #tpu.memory_space<vmem>>, vector<2x128xf32>,
    %c2 = arith.constant 2 : index
    %c0_20 = arith.constant 0 : index
    %43 = vector.load %arg8[%c2, %c0_20] : memref<16x384xf32, #tpu.memory_space<vmem>>, vector<2x384xf32>
    %44 = arith.truncf %41 : vector<2x128xf32> to vector<2x128xbf16>
    %cst_21 = arith.constant dense<0.000000e+00> : vector<2x384xf32>
    %45 = tpu.matmul %44, %7, %cst_21 {dimension_numbers = #tpu.dot_dimension_numbers<[1], [0], [0], [1], [0, 0, 1, 1], [], []>} : vector<2x128xbf16>, vector<128x384xbf16>, vector<2x384xf32> -> vector<2x384xf32>
    %46 = vector.extract_strided_slice %43 {offsets = [0, 0], sizes = [2, 128], strides = [1, 1]} : vector<2x384xf32> to vector<2x128xf32>
    %47 = vector.extract_strided_slice %45 {offsets = [0, 0], sizes = [2, 128], strides = [1, 1]} : vector<2x384xf32> to vector<2x128xf32>
    %48 = arith.addf %46, %47 : vector<2x128xf32>
    %49 = arith.negf %48 : vector<2x128xf32>
    %50 = math.exp %49 : vector<2x128xf32>
    %cst_22 = arith.constant 1.000000e+00 : f32
    %51 = vector.broadcast %cst_22 : f32 to vector<2x128xf32>
    %52 = arith.addf %51, %50 : vector<2x128xf32>
    %53 = arith.divf %51, %52 : vector<2x128xf32>
    %54 = vector.extract_strided_slice %43 {offsets = [0, 128], sizes = [2, 128], strides = [1, 1]} : vector<2x384xf32> to vector<2x128xf32>
    %55 = vector.extract_strided_slice %45 {offsets = [0, 128], sizes = [2, 128], strides = [1, 1]} : vector<2x384xf32> to vector<2x128xf32>
    %56 = arith.addf %54, %55 : vector<2x128xf32>
    %57 = arith.negf %56 : vector<2x128xf32>
    %58 = math.exp %57 : vector<2x128xf32>
    %cst_23 = arith.constant 1.000000e+00 : f32
    %59 = vector.broadcast %cst_23 : f32 to vector<2x128xf32>
    %60 = arith.addf %59, %58 : vector<2x128xf32>
    %61 = arith.divf %59, %60 : vector<2x128xf32>
    %62 = vector.extract_strided_slice %43 {offsets = [0, 256], sizes = [2, 128], strides = [1, 1]} : vector<2x384xf32> to vector<2x128xf32>
    %63 = vector.extract_strided_slice %45 {offsets = [0, 256], sizes = [2, 128], strides = [1, 1]} : vector<2x384xf32> to vector<2x128xf32>
    %64 = arith.addf %63, %10 : vector<2x128xf32>
    %65 = arith.mulf %53, %64 : vector<2x128xf32>
    %66 = arith.addf %62, %65 : vector<2x128xf32>
    %67 = math.tanh %66 : vector<2x128xf32>
    %cst_24 = arith.constant 1.000000e+00 : f32
    %68 = vector.broadcast %cst_24 : f32 to vector<2x128xf32>
    %69 = arith.subf %68, %61 : vector<2x128xf32>
    %70 = arith.mulf %69, %67 : vector<2x128xf32>
    %71 = arith.mulf %61, %41 : vector<2x128xf32>
    %72 = arith.addf %70, %71 : vector<2x128xf32>
    %c2_25 = arith.constant 2 : index
    %c0_26 = arith.constant 0 : index
    %73 = vector.load %arg9[%c2_25, %c0_26] : memref<16x128xf32, #tpu.memory_space<vmem>>, vector<2x128xf32>
    tpu.vector_store %arg9[%c2_25, %c0_26], %72 {strides = array<i32>} : memref<16x128xf32, #tpu.memory_space<vmem>>, vector<2x128xf32>,
    %c4 = arith.constant 4 : index
    %c0_27 = arith.constant 0 : index
    %74 = vector.load %arg8[%c4, %c0_27] : memref<16x384xf32, #tpu.memory_space<vmem>>, vector<2x384xf32>
    %75 = arith.truncf %72 : vector<2x128xf32> to vector<2x128xbf16>
    %cst_28 = arith.constant dense<0.000000e+00> : vector<2x384xf32>
    %76 = tpu.matmul %75, %7, %cst_28 {dimension_numbers = #tpu.dot_dimension_numbers<[1], [0], [0], [1], [0, 0, 1, 1], [], []>} : vector<2x128xbf16>, vector<128x384xbf16>, vector<2x384xf32> -> vector<2x384xf32>
    %77 = vector.extract_strided_slice %74 {offsets = [0, 0], sizes = [2, 128], strides = [1, 1]} : vector<2x384xf32> to vector<2x128xf32>
    %78 = vector.extract_strided_slice %76 {offsets = [0, 0], sizes = [2, 128], strides = [1, 1]} : vector<2x384xf32> to vector<2x128xf32>
    %79 = arith.addf %77, %78 : vector<2x128xf32>
    %80 = arith.negf %79 : vector<2x128xf32>
    %81 = math.exp %80 : vector<2x128xf32>
    %cst_29 = arith.constant 1.000000e+00 : f32
    %82 = vector.broadcast %cst_29 : f32 to vector<2x128xf32>
    %83 = arith.addf %82, %81 : vector<2x128xf32>
    %84 = arith.divf %82, %83 : vector<2x128xf32>
    %85 = vector.extract_strided_slice %74 {offsets = [0, 128], sizes = [2, 128], strides = [1, 1]} : vector<2x384xf32> to vector<2x128xf32>
    %86 = vector.extract_strided_slice %76 {offsets = [0, 128], sizes = [2, 128], strides = [1, 1]} : vector<2x384xf32> to vector<2x128xf32>
    %87 = arith.addf %85, %86 : vector<2x128xf32>
    %88 = arith.negf %87 : vector<2x128xf32>
    %89 = math.exp %88 : vector<2x128xf32>
    %cst_30 = arith.constant 1.000000e+00 : f32
    %90 = vector.broadcast %cst_30 : f32 to vector<2x128xf32>
    %91 = arith.addf %90, %89 : vector<2x128xf32>
    %92 = arith.divf %90, %91 : vector<2x128xf32>
    %93 = vector.extract_strided_slice %74 {offsets = [0, 256], sizes = [2, 128], strides = [1, 1]} : vector<2x384xf32> to vector<2x128xf32>
    %94 = vector.extract_strided_slice %76 {offsets = [0, 256], sizes = [2, 128], strides = [1, 1]} : vector<2x384xf32> to vector<2x128xf32>
    %95 = arith.addf %94, %10 : vector<2x128xf32>
    %96 = arith.mulf %84, %95 : vector<2x128xf32>
    %97 = arith.addf %93, %96 : vector<2x128xf32>
    %98 = math.tanh %97 : vector<2x128xf32>
    %cst_31 = arith.constant 1.000000e+00 : f32
    %99 = vector.broadcast %cst_31 : f32 to vector<2x128xf32>
    %100 = arith.subf %99, %92 : vector<2x128xf32>
    %101 = arith.mulf %100, %98 : vector<2x128xf32>
    %102 = arith.mulf %92, %72 : vector<2x128xf32>
    %103 = arith.addf %101, %102 : vector<2x128xf32>
    %c4_32 = arith.constant 4 : index
    %c0_33 = arith.constant 0 : index
    %104 = vector.load %arg9[%c4_32, %c0_33] : memref<16x128xf32, #tpu.memory_space<vmem>>, vector<2x128xf32>
    tpu.vector_store %arg9[%c4_32, %c0_33], %103 {strides = array<i32>} : memref<16x128xf32, #tpu.memory_space<vmem>>, vector<2x128xf32>,
    %c6 = arith.constant 6 : index
    %c0_34 = arith.constant 0 : index
    %105 = vector.load %arg8[%c6, %c0_34] : memref<16x384xf32, #tpu.memory_space<vmem>>, vector<2x384xf32>
    %106 = arith.truncf %103 : vector<2x128xf32> to vector<2x128xbf16>
    %cst_35 = arith.constant dense<0.000000e+00> : vector<2x384xf32>
    %107 = tpu.matmul %106, %7, %cst_35 {dimension_numbers = #tpu.dot_dimension_numbers<[1], [0], [0], [1], [0, 0, 1, 1], [], []>} : vector<2x128xbf16>, vector<128x384xbf16>, vector<2x384xf32> -> vector<2x384xf32>
    %108 = vector.extract_strided_slice %105 {offsets = [0, 0], sizes = [2, 128], strides = [1, 1]} : vector<2x384xf32> to vector<2x128xf32>
    %109 = vector.extract_strided_slice %107 {offsets = [0, 0], sizes = [2, 128], strides = [1, 1]} : vector<2x384xf32> to vector<2x128xf32>
    %110 = arith.addf %108, %109 : vector<2x128xf32>
    %111 = arith.negf %110 : vector<2x128xf32>
    %112 = math.exp %111 : vector<2x128xf32>
    %cst_36 = arith.constant 1.000000e+00 : f32
    %113 = vector.broadcast %cst_36 : f32 to vector<2x128xf32>
    %114 = arith.addf %113, %112 : vector<2x128xf32>
    %115 = arith.divf %113, %114 : vector<2x128xf32>
    %116 = vector.extract_strided_slice %105 {offsets = [0, 128], sizes = [2, 128], strides = [1, 1]} : vector<2x384xf32> to vector<2x128xf32>
    %117 = vector.extract_strided_slice %107 {offsets = [0, 128], sizes = [2, 128], strides = [1, 1]} : vector<2x384xf32> to vector<2x128xf32>
    %118 = arith.addf %116, %117 : vector<2x128xf32>
    %119 = arith.negf %118 : vector<2x128xf32>
    %120 = math.exp %119 : vector<2x128xf32>
    %cst_37 = arith.constant 1.000000e+00 : f32
    %121 = vector.broadcast %cst_37 : f32 to vector<2x128xf32>
    %122 = arith.addf %121, %120 : vector<2x128xf32>
    %123 = arith.divf %121, %122 : vector<2x128xf32>
    %124 = vector.extract_strided_slice %105 {offsets = [0, 256], sizes = [2, 128], strides = [1, 1]} : vector<2x384xf32> to vector<2x128xf32>
    %125 = vector.extract_strided_slice %107 {offsets = [0, 256], sizes = [2, 128], strides = [1, 1]} : vector<2x384xf32> to vector<2x128xf32>
    %126 = arith.addf %125, %10 : vector<2x128xf32>
    %127 = arith.mulf %115, %126 : vector<2x128xf32>
    %128 = arith.addf %124, %127 : vector<2x128xf32>
    %129 = math.tanh %128 : vector<2x128xf32>
    %cst_38 = arith.constant 1.000000e+00 : f32
    %130 = vector.broadcast %cst_38 : f32 to vector<2x128xf32>
    %131 = arith.subf %130, %123 : vector<2x128xf32>
    %132 = arith.mulf %131, %129 : vector<2x128xf32>
    %133 = arith.mulf %123, %103 : vector<2x128xf32>
    %134 = arith.addf %132, %133 : vector<2x128xf32>
    %c6_39 = arith.constant 6 : index
    %c0_40 = arith.constant 0 : index
    %135 = vector.load %arg9[%c6_39, %c0_40] : memref<16x128xf32, #tpu.memory_space<vmem>>, vector<2x128xf32>
    tpu.vector_store %arg9[%c6_39, %c0_40], %134 {strides = array<i32>} : memref<16x128xf32, #tpu.memory_space<vmem>>, vector<2x128xf32>,
    %c8 = arith.constant 8 : index
    %c0_41 = arith.constant 0 : index
    %136 = vector.load %arg8[%c8, %c0_41] : memref<16x384xf32, #tpu.memory_space<vmem>>, vector<2x384xf32>
    %137 = arith.truncf %134 : vector<2x128xf32> to vector<2x128xbf16>
    %cst_42 = arith.constant dense<0.000000e+00> : vector<2x384xf32>
    %138 = tpu.matmul %137, %7, %cst_42 {dimension_numbers = #tpu.dot_dimension_numbers<[1], [0], [0], [1], [0, 0, 1, 1], [], []>} : vector<2x128xbf16>, vector<128x384xbf16>, vector<2x384xf32> -> vector<2x384xf32>
    %139 = vector.extract_strided_slice %136 {offsets = [0, 0], sizes = [2, 128], strides = [1, 1]} : vector<2x384xf32> to vector<2x128xf32>
    %140 = vector.extract_strided_slice %138 {offsets = [0, 0], sizes = [2, 128], strides = [1, 1]} : vector<2x384xf32> to vector<2x128xf32>
    %141 = arith.addf %139, %140 : vector<2x128xf32>
    %142 = arith.negf %141 : vector<2x128xf32>
    %143 = math.exp %142 : vector<2x128xf32>
    %cst_43 = arith.constant 1.000000e+00 : f32
    %144 = vector.broadcast %cst_43 : f32 to vector<2x128xf32>
    %145 = arith.addf %144, %143 : vector<2x128xf32>
    %146 = arith.divf %144, %145 : vector<2x128xf32>
    %147 = vector.extract_strided_slice %136 {offsets = [0, 128], sizes = [2, 128], strides = [1, 1]} : vector<2x384xf32> to vector<2x128xf32>
    %148 = vector.extract_strided_slice %138 {offsets = [0, 128], sizes = [2, 128], strides = [1, 1]} : vector<2x384xf32> to vector<2x128xf32>
    %149 = arith.addf %147, %148 : vector<2x128xf32>
    %150 = arith.negf %149 : vector<2x128xf32>
    %151 = math.exp %150 : vector<2x128xf32>
    %cst_44 = arith.constant 1.000000e+00 : f32
    %152 = vector.broadcast %cst_44 : f32 to vector<2x128xf32>
    %153 = arith.addf %152, %151 : vector<2x128xf32>
    %154 = arith.divf %152, %153 : vector<2x128xf32>
    %155 = vector.extract_strided_slice %136 {offsets = [0, 256], sizes = [2, 128], strides = [1, 1]} : vector<2x384xf32> to vector<2x128xf32>
    %156 = vector.extract_strided_slice %138 {offsets = [0, 256], sizes = [2, 128], strides = [1, 1]} : vector<2x384xf32> to vector<2x128xf32>
    %157 = arith.addf %156, %10 : vector<2x128xf32>
    %158 = arith.mulf %146, %157 : vector<2x128xf32>
    %159 = arith.addf %155, %158 : vector<2x128xf32>
    %160 = math.tanh %159 : vector<2x128xf32>
    %cst_45 = arith.constant 1.000000e+00 : f32
    %161 = vector.broadcast %cst_45 : f32 to vector<2x128xf32>
    %162 = arith.subf %161, %154 : vector<2x128xf32>
    %163 = arith.mulf %162, %160 : vector<2x128xf32>
    %164 = arith.mulf %154, %134 : vector<2x128xf32>
    %165 = arith.addf %163, %164 : vector<2x128xf32>
    %c8_46 = arith.constant 8 : index
    %c0_47 = arith.constant 0 : index
    %166 = vector.load %arg9[%c8_46, %c0_47] : memref<16x128xf32, #tpu.memory_space<vmem>>, vector<2x128xf32>
    tpu.vector_store %arg9[%c8_46, %c0_47], %165 {strides = array<i32>} : memref<16x128xf32, #tpu.memory_space<vmem>>, vector<2x128xf32>,
    %c10 = arith.constant 10 : index
    %c0_48 = arith.constant 0 : index
    %167 = vector.load %arg8[%c10, %c0_48] : memref<16x384xf32, #tpu.memory_space<vmem>>, vector<2x384xf32>
    %168 = arith.truncf %165 : vector<2x128xf32> to vector<2x128xbf16>
    %cst_49 = arith.constant dense<0.000000e+00> : vector<2x384xf32>
    %169 = tpu.matmul %168, %7, %cst_49 {dimension_numbers = #tpu.dot_dimension_numbers<[1], [0], [0], [1], [0, 0, 1, 1], [], []>} : vector<2x128xbf16>, vector<128x384xbf16>, vector<2x384xf32> -> vector<2x384xf32>
    %170 = vector.extract_strided_slice %167 {offsets = [0, 0], sizes = [2, 128], strides = [1, 1]} : vector<2x384xf32> to vector<2x128xf32>
    %171 = vector.extract_strided_slice %169 {offsets = [0, 0], sizes = [2, 128], strides = [1, 1]} : vector<2x384xf32> to vector<2x128xf32>
    %172 = arith.addf %170, %171 : vector<2x128xf32>
    %173 = arith.negf %172 : vector<2x128xf32>
    %174 = math.exp %173 : vector<2x128xf32>
    %cst_50 = arith.constant 1.000000e+00 : f32
    %175 = vector.broadcast %cst_50 : f32 to vector<2x128xf32>
    %176 = arith.addf %175, %174 : vector<2x128xf32>
    %177 = arith.divf %175, %176 : vector<2x128xf32>
    %178 = vector.extract_strided_slice %167 {offsets = [0, 128], sizes = [2, 128], strides = [1, 1]} : vector<2x384xf32> to vector<2x128xf32>
    %179 = vector.extract_strided_slice %169 {offsets = [0, 128], sizes = [2, 128], strides = [1, 1]} : vector<2x384xf32> to vector<2x128xf32>
    %180 = arith.addf %178, %179 : vector<2x128xf32>
    %181 = arith.negf %180 : vector<2x128xf32>
    %182 = math.exp %181 : vector<2x128xf32>
    %cst_51 = arith.constant 1.000000e+00 : f32
    %183 = vector.broadcast %cst_51 : f32 to vector<2x128xf32>
    %184 = arith.addf %183, %182 : vector<2x128xf32>
    %185 = arith.divf %183, %184 : vector<2x128xf32>
    %186 = vector.extract_strided_slice %167 {offsets = [0, 256], sizes = [2, 128], strides = [1, 1]} : vector<2x384xf32> to vector<2x128xf32>
    %187 = vector.extract_strided_slice %169 {offsets = [0, 256], sizes = [2, 128], strides = [1, 1]} : vector<2x384xf32> to vector<2x128xf32>
    %188 = arith.addf %187, %10 : vector<2x128xf32>
    %189 = arith.mulf %177, %188 : vector<2x128xf32>
    %190 = arith.addf %186, %189 : vector<2x128xf32>
    %191 = math.tanh %190 : vector<2x128xf32>
    %cst_52 = arith.constant 1.000000e+00 : f32
    %192 = vector.broadcast %cst_52 : f32 to vector<2x128xf32>
    %193 = arith.subf %192, %185 : vector<2x128xf32>
    %194 = arith.mulf %193, %191 : vector<2x128xf32>
    %195 = arith.mulf %185, %165 : vector<2x128xf32>
    %196 = arith.addf %194, %195 : vector<2x128xf32>
    %c10_53 = arith.constant 10 : index
    %c0_54 = arith.constant 0 : index
    %197 = vector.load %arg9[%c10_53, %c0_54] : memref<16x128xf32, #tpu.memory_space<vmem>>, vector<2x128xf32>
    tpu.vector_store %arg9[%c10_53, %c0_54], %196 {strides = array<i32>} : memref<16x128xf32, #tpu.memory_space<vmem>>, vector<2x128xf32>,
    %c12 = arith.constant 12 : index
    %c0_55 = arith.constant 0 : index
    %198 = vector.load %arg8[%c12, %c0_55] : memref<16x384xf32, #tpu.memory_space<vmem>>, vector<2x384xf32>
    %199 = arith.truncf %196 : vector<2x128xf32> to vector<2x128xbf16>
    %cst_56 = arith.constant dense<0.000000e+00> : vector<2x384xf32>
    %200 = tpu.matmul %199, %7, %cst_56 {dimension_numbers = #tpu.dot_dimension_numbers<[1], [0], [0], [1], [0, 0, 1, 1], [], []>} : vector<2x128xbf16>, vector<128x384xbf16>, vector<2x384xf32> -> vector<2x384xf32>
    %201 = vector.extract_strided_slice %198 {offsets = [0, 0], sizes = [2, 128], strides = [1, 1]} : vector<2x384xf32> to vector<2x128xf32>
    %202 = vector.extract_strided_slice %200 {offsets = [0, 0], sizes = [2, 128], strides = [1, 1]} : vector<2x384xf32> to vector<2x128xf32>
    %203 = arith.addf %201, %202 : vector<2x128xf32>
    %204 = arith.negf %203 : vector<2x128xf32>
    %205 = math.exp %204 : vector<2x128xf32>
    %cst_57 = arith.constant 1.000000e+00 : f32
    %206 = vector.broadcast %cst_57 : f32 to vector<2x128xf32>
    %207 = arith.addf %206, %205 : vector<2x128xf32>
    %208 = arith.divf %206, %207 : vector<2x128xf32>
    %209 = vector.extract_strided_slice %198 {offsets = [0, 128], sizes = [2, 128], strides = [1, 1]} : vector<2x384xf32> to vector<2x128xf32>
    %210 = vector.extract_strided_slice %200 {offsets = [0, 128], sizes = [2, 128], strides = [1, 1]} : vector<2x384xf32> to vector<2x128xf32>
    %211 = arith.addf %209, %210 : vector<2x128xf32>
    %212 = arith.negf %211 : vector<2x128xf32>
    %213 = math.exp %212 : vector<2x128xf32>
    %cst_58 = arith.constant 1.000000e+00 : f32
    %214 = vector.broadcast %cst_58 : f32 to vector<2x128xf32>
    %215 = arith.addf %214, %213 : vector<2x128xf32>
    %216 = arith.divf %214, %215 : vector<2x128xf32>
    %217 = vector.extract_strided_slice %198 {offsets = [0, 256], sizes = [2, 128], strides = [1, 1]} : vector<2x384xf32> to vector<2x128xf32>
    %218 = vector.extract_strided_slice %200 {offsets = [0, 256], sizes = [2, 128], strides = [1, 1]} : vector<2x384xf32> to vector<2x128xf32>
    %219 = arith.addf %218, %10 : vector<2x128xf32>
    %220 = arith.mulf %208, %219 : vector<2x128xf32>
    %221 = arith.addf %217, %220 : vector<2x128xf32>
    %222 = math.tanh %221 : vector<2x128xf32>
    %cst_59 = arith.constant 1.000000e+00 : f32
    %223 = vector.broadcast %cst_59 : f32 to vector<2x128xf32>
    %224 = arith.subf %223, %216 : vector<2x128xf32>
    %225 = arith.mulf %224, %222 : vector<2x128xf32>
    %226 = arith.mulf %216, %196 : vector<2x128xf32>
    %227 = arith.addf %225, %226 : vector<2x128xf32>
    %c12_60 = arith.constant 12 : index
    %c0_61 = arith.constant 0 : index
    %228 = vector.load %arg9[%c12_60, %c0_61] : memref<16x128xf32, #tpu.memory_space<vmem>>, vector<2x128xf32>
    tpu.vector_store %arg9[%c12_60, %c0_61], %227 {strides = array<i32>} : memref<16x128xf32, #tpu.memory_space<vmem>>, vector<2x128xf32>,
    %c14 = arith.constant 14 : index
    %c0_62 = arith.constant 0 : index
    %229 = vector.load %arg8[%c14, %c0_62] : memref<16x384xf32, #tpu.memory_space<vmem>>, vector<2x384xf32>
    %230 = arith.truncf %227 : vector<2x128xf32> to vector<2x128xbf16>
    %cst_63 = arith.constant dense<0.000000e+00> : vector<2x384xf32>
    %231 = tpu.matmul %230, %7, %cst_63 {dimension_numbers = #tpu.dot_dimension_numbers<[1], [0], [0], [1], [0, 0, 1, 1], [], []>} : vector<2x128xbf16>, vector<128x384xbf16>, vector<2x384xf32> -> vector<2x384xf32>
    %232 = vector.extract_strided_slice %229 {offsets = [0, 0], sizes = [2, 128], strides = [1, 1]} : vector<2x384xf32> to vector<2x128xf32>
    %233 = vector.extract_strided_slice %231 {offsets = [0, 0], sizes = [2, 128], strides = [1, 1]} : vector<2x384xf32> to vector<2x128xf32>
    %234 = arith.addf %232, %233 : vector<2x128xf32>
    %235 = arith.negf %234 : vector<2x128xf32>
    %236 = math.exp %235 : vector<2x128xf32>
    %cst_64 = arith.constant 1.000000e+00 : f32
    %237 = vector.broadcast %cst_64 : f32 to vector<2x128xf32>
    %238 = arith.addf %237, %236 : vector<2x128xf32>
    %239 = arith.divf %237, %238 : vector<2x128xf32>
    %240 = vector.extract_strided_slice %229 {offsets = [0, 128], sizes = [2, 128], strides = [1, 1]} : vector<2x384xf32> to vector<2x128xf32>
    %241 = vector.extract_strided_slice %231 {offsets = [0, 128], sizes = [2, 128], strides = [1, 1]} : vector<2x384xf32> to vector<2x128xf32>
    %242 = arith.addf %240, %241 : vector<2x128xf32>
    %243 = arith.negf %242 : vector<2x128xf32>
    %244 = math.exp %243 : vector<2x128xf32>
    %cst_65 = arith.constant 1.000000e+00 : f32
    %245 = vector.broadcast %cst_65 : f32 to vector<2x128xf32>
    %246 = arith.addf %245, %244 : vector<2x128xf32>
    %247 = arith.divf %245, %246 : vector<2x128xf32>
    %248 = vector.extract_strided_slice %229 {offsets = [0, 256], sizes = [2, 128], strides = [1, 1]} : vector<2x384xf32> to vector<2x128xf32>
    %249 = vector.extract_strided_slice %231 {offsets = [0, 256], sizes = [2, 128], strides = [1, 1]} : vector<2x384xf32> to vector<2x128xf32>
    %250 = arith.addf %249, %10 : vector<2x128xf32>
    %251 = arith.mulf %239, %250 : vector<2x128xf32>
    %252 = arith.addf %248, %251 : vector<2x128xf32>
    %253 = math.tanh %252 : vector<2x128xf32>
    %cst_66 = arith.constant 1.000000e+00 : f32
    %254 = vector.broadcast %cst_66 : f32 to vector<2x128xf32>
    %255 = arith.subf %254, %247 : vector<2x128xf32>
    %256 = arith.mulf %255, %253 : vector<2x128xf32>
    %257 = arith.mulf %247, %227 : vector<2x128xf32>
    %258 = arith.addf %256, %257 : vector<2x128xf32>
    %c14_67 = arith.constant 14 : index
    %c0_68 = arith.constant 0 : index
    %259 = vector.load %arg9[%c14_67, %c0_68] : memref<16x128xf32, #tpu.memory_space<vmem>>, vector<2x128xf32>
    tpu.vector_store %arg9[%c14_67, %c0_68], %258 {strides = array<i32>} : memref<16x128xf32, #tpu.memory_space<vmem>>, vector<2x128xf32>,
    %c0_69 = arith.constant 0 : index
    %c0_70 = arith.constant 0 : index
    %260 = vector.load %arg9[%c0_69, %c0_70] : memref<16x128xf32, #tpu.memory_space<vmem>>, vector<16x128xf32>
    %261 = arith.truncf %260 : vector<16x128xf32> to vector<16x128xbf16>
    %c0_71 = arith.constant 0 : index
    %c0_72 = arith.constant 0 : index
    %262 = vector.load %arg5[%c0_71, %c0_72] : memref<128x1xbf16, #tpu.memory_space<vmem>>, vector<128x1xbf16>
    %cst_73 = arith.constant dense<0.000000e+00> : vector<16x1xf32>
    %263 = tpu.matmul %261, %262, %cst_73 {dimension_numbers = #tpu.dot_dimension_numbers<[1], [0], [0], [1], [0, 0, 1, 1], [], []>} : vector<16x128xbf16>, vector<128x1xbf16>, vector<16x1xf32> -> vector<16x1xf32>
    %c0_74 = arith.constant 0 : index
    %c0_75 = arith.constant 0 : index
    %264 = vector.load %arg6[%c0_74, %c0_75] : memref<1x1xf32, #tpu.memory_space<vmem>>, vector<1x1xf32>
    %265 = vector.broadcast %264 : vector<1x1xf32> to vector<16x1xf32>
    %266 = arith.addf %263, %265 : vector<16x1xf32>
    %c0_76 = arith.constant 0 : index
    %c0_77 = arith.constant 0 : index
    %267 = vector.load %arg7[%c0_76, %c0_77] : memref<16x1xf32, #tpu.memory_space<vmem>>, vector<16x1xf32>
    tpu.vector_store %arg7[%c0_76, %c0_77], %266 {strides = array<i32>} : memref<16x1xf32, #tpu.memory_space<vmem>>, vector<16x1xf32>,
    return
  }
}

</mosaic_0001>

<bundles_post_ra>
// kernel: rnn_block_forward.1
= control target key start
LH: loop header
LB: loop body
LE: loop exit
PB: predicated region body
PF: predicated region fallthrough
CT: control target
= control target key end

     0   :  { %v2092_v1 = vmov 0.0   ;;  %v2093_v2 = vmov 0   ;;  %vm2094_vm0 = vmmov 0   ;;  %v65_v51 = vlaneseq  ;;  %s2774_s1 = inlined_call_operand.vmem [shape: bf16[128,384], index: 1, kind: input, shape index: {}]   ;;  %s2775_s0 = inlined_call_operand.vmem [shape: bf16[16,128], index: 0, kind: input, shape index: {}]   ;;  %s2776_s2 = inlined_call_operand.vmem [shape: bf16[128,384], index: 2, kind: input, shape index: {}]   ;;  %s2777_s3 = inlined_call_operand.vmem [shape: f32[1,384], index: 3, kind: input, shape index: {}]   ;;  %s2778_s4 = inlined_call_operand.vmem [shape: f32[1,128], index: 4, kind: input, shape index: {}]   ;;  %s2779_s5 = inlined_call_operand.vmem [shape: bf16[128,1], index: 5, kind: input, shape index: {}]   ;;  %s2780_s6 = inlined_call_operand.<no memory space> [shape: f32[1,1], index: 6, kind: input, shape index: {}]   ;;  %s2781_s7 = inlined_call_operand.vmem [shape: f32[16,1], index: 7, kind: output, shape index: {}]  }
   0x1   :  { %v1914_v0 = vld [vmem:[%s2774_s1 + $0xac] ss:$12 sps:$4 sm:$0xff]   ;;  %1711 = vmatprep.subr.bf16.mxu1 %v2092_v1  ;;  %246 = vmatprep.mubr.bf16.mxu0 %v2093_v2  ;;  %v1916_v3 = vld [vmem:[%s2774_s1 + $0xa8] ss:$12 sps:$4 sm:$0xff]   ;;  %v1919_v5 = vld [vmem:[%s2774_s1 + $0x90] ss:$12 sps:$4 sm:$0xff]  }
   0x2   :  { %1727 = vmatprep.mubr.msk.bf16.mxu1 %vm2094_vm0, %v2092_v1  ;;  %214 = vmatprep.subr.bf16.mxu0 %v1914_v0  ;;  %v1917_v4 = vld [vmem:[%s2774_s1 + $0x94] ss:$12 sps:$4 sm:$0xff]   ;;  %v1920_v6 = vld [vmem:[%s2774_s1 + $0x7c] ss:$12 sps:$4 sm:$0xff]   ;;  %v1922_v7 = vld [vmem:[%s2774_s1 + $0x78] ss:$12 sps:$4 sm:$0xff]  }
   0x3   :  { %215 = vmatpush1.bf16.msra.mxu0 %v1916_v3  ;;  %v1923_v8 = vld [vmem:[%s2774_s1 + $0x64] ss:$12 sps:$4 sm:$0xff]   ;;  %v1925_v10 = vld [vmem:[%s2774_s1 + $0x60] ss:$12 sps:$4 sm:$0xff]   ;;  %v1928_v13 = vld [vmem:[%s2774_s1 + $0x48] ss:$12 sps:$4 sm:$0xff]  }
   0x4   :  { %216 = vmatprep.subr.bf16.mxu0 %v1917_v4  ;;  %v1935_v9 = vld [vmem:[%s2774_s1 + $0xb0] ss:$12 sps:$4 sm:$0xff]   ;;  %v1926_v11 = vld [vmem:[%s2774_s1 + $0x4c] ss:$12 sps:$4 sm:$0xff]   ;;  %v1929_v14 = vld [vmem:[%s2774_s1 + $0x34] ss:$12 sps:$4 sm:$0xff]  }
   0x5   :  { %1712 = vmatpush3.bf16.msra.mxu1 %v1935_v9  ;;  %v1939_v12 = vld [vmem:[%s2774_s1 + $0x98] ss:$12 sps:$4 sm:$0xff]   ;;  %v1944_v15 = vld [vmem:[%s2774_s1 + $0x80] ss:$12 sps:$4 sm:$0xff]   ;;  %v1931_v16 = vld [vmem:[%s2774_s1 + $0x30] ss:$12 sps:$4 sm:$0xff]  }
   0x6   :  { %1713 = vmatprep.subr.bf16.mxu1 %v2092_v1  ;;  %v1932_v17 = vld [vmem:[%s2774_s1 + $0x1c] ss:$12 sps:$4 sm:$0xff]   ;;  %v1934_v19 = vld [vmem:[%s2774_s1 + $0x18] ss:$12 sps:$4 sm:$0xff]   ;;  %v1938_v22 = vld [vmem:[%s2774_s1] ss:$12 sps:$4 sm:$0xff]  }
   0x7   :  { %217 = vmatpush1.bf16.msra.mxu0 %v1919_v5  ;;  %v1948_v18 = vld [vmem:[%s2774_s1 + $0x68] ss:$12 sps:$4 sm:$0xff]   ;;  %v1936_v20 = vld [vmem:[%s2774_s1 + $0x4] ss:$12 sps:$4 sm:$0xff]   ;;  %v2209_v23 = vld [vmem:[%s2776_s2 + $0xac] ss:$12 sps:$4 sm:$0xff]  }
   0x8   :  { %218 = vmatprep.subr.bf16.mxu0 %v1920_v6  ;;  %v1952_v21 = vld [vmem:[%s2774_s1 + $0x50] ss:$12 sps:$4 sm:$0xff]   ;;  %v1956_v24 = vld [vmem:[%s2774_s1 + $0x38] ss:$12 sps:$4 sm:$0xff]   ;;  %v2221_v26 = vld [vmem:[%s2776_s2 + $0xa8] ss:$12 sps:$4 sm:$0xff]  }
   0x9   :  { %1714 = vmatpush3.bf16.msra.mxu1 %v1939_v12  ;;  %v1940_v25 = vld [vmem:[%s2775_s0] sm:$0xff]   ;;  %v2236_v29 = vld [vmem:[%s2776_s2 + $0x90] ss:$12 sps:$4 sm:$0xff]   ;;  %v1964_v31 = vld [vmem:[%s2774_s1 + $0x8] ss:$12 sps:$4 sm:$0xff]   ;;  %v66_v52 = vshrl.u32 %v65_v51, 7 }
   0xa   :  { %1715 = vmatprep.subr.bf16.mxu1 %v2092_v1  ;;  %v2226_v27 = vld [vmem:[%s2776_s2 + $0x94] ss:$12 sps:$4 sm:$0xff]   ;;  %v2242_v30 = vld [vmem:[%s2776_s2 + $0x7c] ss:$12 sps:$4 sm:$0xff]   ;;  %v2254_v32 = vld [vmem:[%s2776_s2 + $0x78] ss:$12 sps:$4 sm:$0xff]  }
   0xb   :  { %219 = vmatpush1.bf16.msra.mxu0 %v1922_v7  ;;  %v1960_v28 = vld [vmem:[%s2774_s1 + $0x20] ss:$12 sps:$4 sm:$0xff]   ;;  %v2260_v33 = vld [vmem:[%s2776_s2 + $0x64] ss:$12 sps:$4 sm:$0xff]   ;;  %v2293_v38 = vld [vmem:[%s2776_s2 + $0x48] ss:$12 sps:$4 sm:$0xff]  }
   0xc   :  { %220 = vmatprep.subr.bf16.mxu0 %v1923_v8  ;;  %v2265_v34 = vld [vmem:[%s2776_s2 + $0xb0] ss:$12 sps:$4 sm:$0xff]   ;;  %v2272_v35 = vld [vmem:[%s2776_s2 + $0x60] ss:$12 sps:$4 sm:$0xff]   ;;  %v2284_v37 = vld [vmem:[%s2776_s2 + $0x98] ss:$12 sps:$4 sm:$0xff]  }
   0xd   :  { %1716 = vmatpush3.bf16.msra.mxu1 %v1944_v15  ;;  %v2278_v36 = vld [vmem:[%s2776_s2 + $0x4c] ss:$12 sps:$4 sm:$0xff]   ;;  %v2299_v39 = vld [vmem:[%s2776_s2 + $0x34] ss:$12 sps:$4 sm:$0xff]   ;;  %v2312_v41 = vld [vmem:[%s2776_s2 + $0x30] ss:$12 sps:$4 sm:$0xff]  }
   0xe   :  { %1717 = vmatprep.subr.bf16.mxu1 %v2092_v1  ;;  %v2305_v40 = vld [vmem:[%s2776_s2 + $0x80] ss:$12 sps:$4 sm:$0xff]   ;;  %v2318_v42 = vld [vmem:[%s2776_s2 + $0x1c] ss:$12 sps:$4 sm:$0xff]   ;;  %v2331_v44 = vld [vmem:[%s2776_s2 + $0x18] ss:$12 sps:$4 sm:$0xff]  }
   0xf   :  { %221 = vmatpush1.bf16.msra.mxu0 %v1925_v10  ;;  %v2324_v43 = vld [vmem:[%s2776_s2 + $0x68] ss:$12 sps:$4 sm:$0xff]   ;;  %v2337_v45 = vld [vmem:[%s2776_s2 + $0x4] ss:$12 sps:$4 sm:$0xff]   ;;  %v2350_v47 = vld [vmem:[%s2776_s2] ss:$12 sps:$4 sm:$0xff]  }
  0x10   :  { %222 = vmatprep.subr.bf16.mxu0 %v1926_v11  ;;  %v2343_v46 = vld [vmem:[%s2776_s2 + $0x50] ss:$12 sps:$4 sm:$0xff]   ;;  %v2357_v48 = vld [vmem:[%s2776_s2 + $0x38] ss:$12 sps:$4 sm:$0xff]   ;;  %v2365_v49 = vld [vmem:[%s2776_s2 + $0x20] ss:$12 sps:$4 sm:$0xff]  }
  0x11   :  { %1718 = vmatpush3.bf16.msra.mxu1 %v1948_v18  ;;  %v2376_v50 = vld [vmem:[%s2776_s2 + $0x8] ss:$12 sps:$4 sm:$0xff]   ;;  %v67_v53 = vsub.s32 0, %v66_v52  ;;  %v63_v54 = vld [vmem:[%s2777_s3] sm:$0x7]  ;;  %v71_v55 = vsub.s32 1, %v66_v52 }
  0x12   :  { %1719 = vmatprep.subr.bf16.mxu1 %v2092_v1  ;;  %v75_v61 = vsub.s32 2, %v66_v52  ;;  %vm1539_vm1 = vcmask 7168  }
  0x13   :  { %223 = vmatpush1.bf16.msra.mxu0 %v1928_v13  ;;  %v68_v56 = vrot.slane %v63_v54, %v67_v53  ;;  %v72_v57 = vrot.slane %v63_v54, %v71_v55  ;;  %v2421_v53 = vld [vmem:[%s2778_s4] ss:$0 sm:$0xff] }
  0x14   :  { %224 = vmatprep.subr.bf16.mxu0 %v1929_v14  ;;  %v76_v4 = vrot.slane %v63_v54, %v75_v61 }
  0x15   :  { %1720 = vmatpush3.bf16.msra.mxu1 %v1952_v21 }
  0x16   :  { %1721 = vmatprep.subr.bf16.mxu1 %v2092_v1 }
  0x17   :  { %225 = vmatpush1.bf16.msra.mxu0 %v1931_v16 }
  0x18   :  { %226 = vmatprep.subr.bf16.mxu0 %v1932_v17 }
  0x19   :  { %1722 = vmatpush3.bf16.msra.mxu1 %v1956_v24 }
  0x1a   :  { %1723 = vmatprep.subr.bf16.mxu1 %v2092_v1 }
  0x1b   :  { %227 = vmatpush1.bf16.msra.mxu0 %v1934_v19 }
  0x1c   :  { %228 = vmatprep.subr.bf16.mxu0 %v1936_v20 }
  0x1d   :  { %1724 = vmatpush3.bf16.msra.mxu1 %v1960_v28 }
  0x1e   :  { %1725 = vmatprep.subr.bf16.mxu1 %v2092_v1 }
  0x1f   :  { %229 = vmatpush1.bf16.msra.mxu0 %v1938_v22 }
  0x20   :  { %474 = vmatprep.subr.bf16.mxu0 %v2209_v23 }
  0x21   :  { %1726 = vmatpush3.bf16.msra.mxu1 %v1964_v31 }
  0x22   :  { %247 = vmatmul.mubr.bf16.vlgmr.msra.gmra.mxu0 %v1940_v25  ;;  %1731 = vmatprep.subr.bf16.mxu1 %v2092_v1 }
  0x23   :  { %475 = vmatpush1.bf16.msra.mxu0 %v2221_v26  ;;  %506 = vmatprep.mubr.bf16.mxu0 %v2093_v2 }
  0x24   :  { %476 = vmatprep.subr.bf16.mxu0 %v2226_v27  ;;  %1728 = vmatmul.mubr.bf16.vlgmr.msra.gmra.mxu1 %v1940_v25 }
  0x25   :  { %1732 = vmatpush3.bf16.msra.mxu1 %v2265_v34  ;;  %1747 = vmatprep.mubr.msk.bf16.mxu1 %vm2094_vm0, %v2092_v1 }
  0x26   :  { %1733 = vmatprep.subr.bf16.mxu1 %v2092_v1 }
  0x27   :  { %477 = vmatpush1.bf16.msra.mxu0 %v2236_v29 }
  0x28   :  { %478 = vmatprep.subr.bf16.mxu0 %v2242_v30 }
  0x29   :  { %1734 = vmatpush3.bf16.msra.mxu1 %v2284_v37 }
  0x2a   :  { %1735 = vmatprep.subr.bf16.mxu1 %v2092_v1 }
  0x2b   :  { %479 = vmatpush1.bf16.msra.mxu0 %v2254_v32 }
  0x2c   :  { %480 = vmatprep.subr.bf16.mxu0 %v2260_v33 }
  0x2d   :  { %1736 = vmatpush3.bf16.msra.mxu1 %v2305_v40 }
  0x2e   :  { %1737 = vmatprep.subr.bf16.mxu1 %v2092_v1 }
  0x2f   :  { %481 = vmatpush1.bf16.msra.mxu0 %v2272_v35 }
  0x30   :  { %482 = vmatprep.subr.bf16.mxu0 %v2278_v36 }
  0x31   :  { %1738 = vmatpush3.bf16.msra.mxu1 %v2324_v43 }
  0x32   :  { %1739 = vmatprep.subr.bf16.mxu1 %v2092_v1 }
  0x33   :  { %483 = vmatpush1.bf16.msra.mxu0 %v2293_v38 }
  0x34   :  { %484 = vmatprep.subr.bf16.mxu0 %v2299_v39 }
  0x35   :  { %1740 = vmatpush3.bf16.msra.mxu1 %v2343_v46 }
  0x36   :  { %1741 = vmatprep.subr.bf16.mxu1 %v2092_v1 }
  0x37   :  { %485 = vmatpush1.bf16.msra.mxu0 %v2312_v41 }
  0x38   :  { %486 = vmatprep.subr.bf16.mxu0 %v2318_v42 }
  0x39   :  { %1742 = vmatpush3.bf16.msra.mxu1 %v2357_v48 }
  0x3a   :  { %1743 = vmatprep.subr.bf16.mxu1 %v2092_v1 }
  0x3b   :  { %487 = vmatpush1.bf16.msra.mxu0 %v2331_v44 }
  0x3c   :  { %488 = vmatprep.subr.bf16.mxu0 %v2337_v45 }
  0x3d   :  { %1744 = vmatpush3.bf16.msra.mxu1 %v2365_v49 }
  0x3e   :  { %1745 = vmatprep.subr.bf16.mxu1 %v2092_v1 }
  0x3f   :  { %489 = vmatpush1.bf16.msra.mxu0 %v2350_v47 }
  0x40   :  { %582 = vmatprep.subr.bf16.mxu0 %v2209_v23 }
  0x41   :  { %1746 = vmatpush3.bf16.msra.mxu1 %v2376_v50 }
  0x42   :  { %507 = vmatmul.mubr.bf16.vlgmr.msra.gmra.mxu0 %v2093_v2  ;;  %1751 = vmatprep.subr.bf16.mxu1 %v2092_v1 }
  0x43   :  { %583 = vmatpush1.bf16.msra.mxu0 %v2221_v26  ;;  %614 = vmatprep.mubr.bf16.mxu0 %v2093_v2 }
  0x44   :  { %584 = vmatprep.subr.bf16.mxu0 %v2226_v27  ;;  %1748 = vmatmul.mubr.bf16.vlgmr.msra.gmra.mxu1 %v2093_v2 }
  0x45   :  { %1752 = vmatpush3.bf16.msra.mxu1 %v2265_v34  ;;  %1767 = vmatprep.mubr.msk.bf16.mxu1 %vm2094_vm0, %v2092_v1 }
  0x46   :  { %1753 = vmatprep.subr.bf16.mxu1 %v2092_v1 }
  0x47   :  { %585 = vmatpush1.bf16.msra.mxu0 %v2236_v29 }
  0x48   :  { %586 = vmatprep.subr.bf16.mxu0 %v2242_v30 }
  0x49   :  { %1754 = vmatpush3.bf16.msra.mxu1 %v2284_v37 }
  0x4a   :  { %1755 = vmatprep.subr.bf16.mxu1 %v2092_v1 }
  0x4b   :  { %587 = vmatpush1.bf16.msra.mxu0 %v2254_v32 }
  0x4c   :  { %588 = vmatprep.subr.bf16.mxu0 %v2260_v33 }
  0x4d   :  { %1756 = vmatpush3.bf16.msra.mxu1 %v2305_v40 }
  0x4e   :  { %1757 = vmatprep.subr.bf16.mxu1 %v2092_v1 }
  0x4f   :  { %589 = vmatpush1.bf16.msra.mxu0 %v2272_v35 }
  0x50   :  { %590 = vmatprep.subr.bf16.mxu0 %v2278_v36 }
  0x51   :  { %1758 = vmatpush3.bf16.msra.mxu1 %v2324_v43 }
  0x52   :  { %1759 = vmatprep.subr.bf16.mxu1 %v2092_v1 }
  0x53   :  { %591 = vmatpush1.bf16.msra.mxu0 %v2293_v38 }
  0x54   :  { %592 = vmatprep.subr.bf16.mxu0 %v2299_v39 }
  0x55   :  { %1760 = vmatpush3.bf16.msra.mxu1 %v2343_v46 }
  0x56   :  { %1761 = vmatprep.subr.bf16.mxu1 %v2092_v1 }
  0x57   :  { %593 = vmatpush1.bf16.msra.mxu0 %v2312_v41 }
  0x58   :  { %594 = vmatprep.subr.bf16.mxu0 %v2318_v42 }
  0x59   :  { %1762 = vmatpush3.bf16.msra.mxu1 %v2357_v48 }
  0x5a   :  { %1763 = vmatprep.subr.bf16.mxu1 %v2092_v1 }
  0x5b   :  { %595 = vmatpush1.bf16.msra.mxu0 %v2331_v44 }
  0x5c   :  { %596 = vmatprep.subr.bf16.mxu0 %v2337_v45 }
  0x5d   :  { %1764 = vmatpush3.bf16.msra.mxu1 %v2365_v49 }
  0x5e   :  { %1765 = vmatprep.subr.bf16.mxu1 %v2092_v1 }
  0x5f   :  { %597 = vmatpush1.bf16.msra.mxu0 %v2350_v47 }
  0x60   :  { %705 = vmatprep.subr.bf16.mxu0 %v2209_v23 }
  0x61   :  { %1766 = vmatpush3.bf16.msra.mxu1 %v2376_v50 }
  0x62   :  { %1771 = vmatprep.subr.bf16.mxu1 %v2092_v1 }
  0xe2   :  { %v248_v58 = vpop.f32.mrf.mxu0 }
  0xe3   :  { %v249_v59 = vadd.f32 %v248_v58, %v68_v56 }
  0xe4   :  { %v250_v60 = vpop.f32.mrf.mxu0  ;;  %v291_v6 = vpop.f32.mrf.mxu1 }
  0xe5   :  { %298 = vst [vmem:[#allocation2 + $0x28] sm:$0xff] %v249_v59  ;;  %v251_v62 = vadd.f32 %v250_v60, %v72_v57  ;;  %v292_v7 = vadd.f32 %v291_v6, %v76_v4 }
  0xe6   :  { %v252_v63 = vpop.f32.mrf.mxu0  ;;  %v1729_v8 = vpop.f32.mrf.mxu1 }
  0xe7   :  { %299 = vst [vmem:[#allocation2 + $0x10] sm:$0xff] %v251_v62  ;;  %v253_v0 = vadd.f32 %v252_v63, %v68_v56  ;;  %300 = vst [vmem:[#allocation2 + $0x8] sm:$0xff] %v292_v7 }
  0xe8   :  { %v254_v3 = vpop.f32.mrf.mxu0  ;;  %v294_v9 = vpop.f32.mrf.mxu1 }
  0xe9   :  { %301 = vst [vmem:[#allocation2] sm:$0xff] %v253_v0  ;;  %v255_v5 = vadd.f32 %v254_v3, %v72_v57  ;;  %v295_v10 = vadd.f32 %v294_v9, %v76_v4 }
  0xea   :  { %v1730_v11 = vpop.f32.mrf.mxu1 }
  0xeb   :  { %302 = vst [vmem:[#allocation2 + $0x18] sm:$0xff] %v255_v5  ;;  %303 = vst [vmem:[#allocation2 + $0x20] sm:$0xff] %v295_v10 }
  0xec   :  { %v343_v12 = vld [vmem:[#allocation2 + $0x28] sm:$0x3]  ;;  %v578_v8 = vld [vmem:[#allocation2 + $0x28] sm:$0xc] }
  0xee   :  { %v344_v18 = vld [vmem:[#allocation2 + $0x10] sm:$0x3]  ;;  %v345_v58 = vld [vmem:[#allocation2 + $0x8] sm:$0x3] }
 0x102   :  { %v508_v13 = vpop.f32.mrf.mxu0 }
 0x103   :  { %v555_v14 = vadd.f32 %v508_v13, %v343_v12 }
 0x104   :  { %v510_v15 = vpop.f32.mrf.mxu0  ;;  %v549_v21 = vpop.f32.mrf.mxu1 }
 0x105   :  { %v1596_v16 = vmul.f32 -1.442695, %v555_v14  ;;  %v562_v20 = vadd.f32 %v510_v15, %v344_v18  ;;  %v569_v55 = vadd.f32 %v2421_v53, %v549_v21  ;;  %v579_v18 = vld [vmem:[#allocation2 + $0x10] sm:$0xc] }
 0x106   :  { %v512_v17 = vpop.f32.mrf.mxu0  ;;  %v1749_v24 = vpop.f32.mrf.mxu1 }
 0x107   :  { %1987 = vpow2.f32 %v1596_v16  ;;  %v1597_v22 = vmul.f32 -1.442695, %v562_v20 }
 0x108   :  { %v513_v19 = vpop.f32.mrf.mxu0  ;;  %v552_v25 = vpop.f32.mrf.mxu1 }
 0x109   :  { %1989 = vpow2.f32 %v1597_v22 }
 0x10a   :  { %v1750_v28 = vpop.f32.mrf.mxu1 }
 0x114   :  { %v1988_v31 = vpop.eup %1987 }
 0x115   :  { %v559_v51 = vadd.f32 1.0, %v1988_v31 }
 0x116   :  { %v1990_v52 = vpop.eup %1989 }
 0x117   :  { %1991 = vrcp.f32 %v559_v51  ;;  %v566_v54 = vadd.f32 1.0, %v1990_v52 }
 0x119   :  { %1993 = vrcp.f32 %v566_v54  ;;  %v580_v54 = vld [vmem:[#allocation2 + $0x8] sm:$0xc] }
 0x124   :  { %v1992_v56 = vpop.eup %1991 }
 0x125   :  { %v570_v57 = vmul.f32 %v1992_v56, %v569_v55 }
 0x126   :  { %v1994_v60 = vpop.eup %1993 }
 0x127   :  { %v571_v59 = vadd.f32 %v570_v57, %v345_v58  ;;  %v573_v61 = vsub.f32 1.0, %v1994_v60  ;;  %v575_v0 = vmul.f32 0.0, %v1994_v60 }
 0x129   :  { %1995 = vtanh.f32 %v571_v59 }
 0x136   :  { %v1996_v62 = vpop.eup %1995 }
 0x137   :  { %v574_v63 = vmul.f32 %v1996_v62, %v573_v61 }
 0x139   :  { %v2424_v3 = vadd.f32 %v575_v0, %v574_v63 }
 0x13b   :  { %577 = vst [vmem:[#allocation3] sm:$0x3] %v2424_v3  ;;  %v581_v4 = vpack.c.bf16 %v2424_v3, %v2424_v3  ;;  %v693_v58 = vrot.slane %v2424_v3, 6 }
 0x13d   :  { %615 = vmatmul.mubr.bf16.vlgmr.msra.gmra.mxu0 %v581_v4  ;;  %1768 = vmatmul.mubr.bf16.vlgmr.msra.gmra.mxu1 %v581_v4 }
 0x13e   :  { %706 = vmatpush1.bf16.msra.mxu0 %v2221_v26  ;;  %1772 = vmatpush3.bf16.msra.mxu1 %v2265_v34 }
 0x13f   :  { %707 = vmatprep.subr.bf16.mxu0 %v2226_v27  ;;  %1773 = vmatprep.subr.bf16.mxu1 %v2092_v1 }
 0x140   :  { %737 = vmatprep.mubr.bf16.mxu0 %v2093_v2  ;;  %1787 = vmatprep.mubr.msk.bf16.mxu1 %vm2094_vm0, %v2092_v1 }
 0x142   :  { %708 = vmatpush1.bf16.msra.mxu0 %v2236_v29  ;;  %1774 = vmatpush3.bf16.msra.mxu1 %v2284_v37 }
 0x143   :  { %709 = vmatprep.subr.bf16.mxu0 %v2242_v30  ;;  %1775 = vmatprep.subr.bf16.mxu1 %v2092_v1 }
 0x146   :  { %710 = vmatpush1.bf16.msra.mxu0 %v2254_v32  ;;  %1776 = vmatpush3.bf16.msra.mxu1 %v2305_v40 }
 0x147   :  { %711 = vmatprep.subr.bf16.mxu0 %v2260_v33  ;;  %1777 = vmatprep.subr.bf16.mxu1 %v2092_v1 }
 0x14a   :  { %712 = vmatpush1.bf16.msra.mxu0 %v2272_v35  ;;  %1778 = vmatpush3.bf16.msra.mxu1 %v2324_v43 }
 0x14b   :  { %713 = vmatprep.subr.bf16.mxu0 %v2278_v36  ;;  %1779 = vmatprep.subr.bf16.mxu1 %v2092_v1 }
 0x14e   :  { %714 = vmatpush1.bf16.msra.mxu0 %v2293_v38  ;;  %1780 = vmatpush3.bf16.msra.mxu1 %v2343_v46 }
 0x14f   :  { %715 = vmatprep.subr.bf16.mxu0 %v2299_v39  ;;  %1781 = vmatprep.subr.bf16.mxu1 %v2092_v1 }
 0x152   :  { %716 = vmatpush1.bf16.msra.mxu0 %v2312_v41  ;;  %1782 = vmatpush3.bf16.msra.mxu1 %v2357_v48 }
 0x153   :  { %717 = vmatprep.subr.bf16.mxu0 %v2318_v42  ;;  %1783 = vmatprep.subr.bf16.mxu1 %v2092_v1 }
 0x156   :  { %718 = vmatpush1.bf16.msra.mxu0 %v2331_v44  ;;  %1784 = vmatpush3.bf16.msra.mxu1 %v2365_v49 }
 0x157   :  { %719 = vmatprep.subr.bf16.mxu0 %v2337_v45  ;;  %1785 = vmatprep.subr.bf16.mxu1 %v2092_v1 }
 0x15a   :  { %720 = vmatpush1.bf16.msra.mxu0 %v2350_v47  ;;  %1786 = vmatpush3.bf16.msra.mxu1 %v2376_v50 }
 0x15b   :  { %828 = vmatprep.subr.bf16.mxu0 %v2209_v23  ;;  %1791 = vmatprep.subr.bf16.mxu1 %v2092_v1 }
 0x1fd   :  { %v616_v5 = vpop.f32.mrf.mxu0  ;;  %v657_v6 = vpop.f32.mrf.mxu1 }
 0x1fe   :  { %v664_v7 = vrot.slane %v616_v5, 6  ;;  %v683_v25 = vadd.f32 %v2421_v53, %v657_v6  ;;  %v698_v6 = vld [vmem:[#allocation2 + $0x28] sm:$0x30] }
 0x1ff   :  { %v618_v9 = vpop.f32.mrf.mxu0  ;;  %v1769_v10 = vpop.f32.mrf.mxu1 }
 0x200   :  { %v666_v11 = vadd.f32 %v664_v7, %v578_v8  ;;  %v674_v15 = vrot.slane %v618_v9, 6  ;;  %v685_v31 = vrot.slane %v683_v25, 6 }
 0x201   :  { %v620_v12 = vpop.f32.mrf.mxu0  ;;  %v660_v13 = vpop.f32.mrf.mxu1 }
 0x202   :  { %v1598_v14 = vmul.f32 -1.442695, %v666_v11  ;;  %v676_v19 = vadd.f32 %v674_v15, %v579_v18 }
 0x203   :  { %v621_v16 = vpop.f32.mrf.mxu0  ;;  %v1770_v17 = vpop.f32.mrf.mxu1 }
 0x204   :  { %1997 = vpow2.f32 %v1598_v14  ;;  %v1599_v20 = vmul.f32 -1.442695, %v676_v19  ;;  %v699_v16 = vld [vmem:[#allocation2 + $0x10] sm:$0x30] }
 0x206   :  { %1999 = vpow2.f32 %v1599_v20 }
 0x211   :  { %v1998_v21 = vpop.eup %1997 }
 0x212   :  { %v670_v22 = vadd.f32 1.0, %v1998_v21 }
 0x213   :  { %v2000_v24 = vpop.eup %1999 }
 0x214   :  { %2001 = vrcp.f32 %v670_v22  ;;  %v680_v28 = vadd.f32 1.0, %v2000_v24 }
 0x216   :  { %2003 = vrcp.f32 %v680_v28 }
 0x221   :  { %v2002_v51 = vpop.eup %2001 }
 0x222   :  { %v687_v52 = vmul.f32 %v2002_v51, %v685_v31  ;;  %v700_v51 = vld [vmem:[#allocation2 + $0x8] sm:$0x30] }
 0x223   :  { %v2004_v56 = vpop.eup %2003 }
 0x224   :  { %v688_v55 = vadd.f32 %v687_v52, %v580_v54  ;;  %v690_v57 = vsub.f32 1.0, %v2004_v56  ;;  %v695_v61 = vmul.f32 %v2004_v56, %v693_v58 }
 0x226   :  { %2005 = vtanh.f32 %v688_v55 }
 0x233   :  { %v2006_v59 = vpop.eup %2005 }
 0x234   :  { %v691_v60 = vmul.f32 %v2006_v59, %v690_v57 }
 0x236   :  { %v2466_v62 = vadd.f32 %v695_v61, %v691_v60 }
 0x238   :  { %697 = vst [vmem:[#allocation3] sm:$0xc] %v2466_v62  ;;  %v701_v63 = vpack.c.bf16 %v2466_v62, %v2466_v62  ;;  %v816_v56 = vrot.slane %v2466_v62, 6 }
 0x23a   :  { %v703_v0 = vrot.slane %v701_v63, 1 }
 0x23c   :  { %738 = vmatmul.mubr.bf16.vlgmr.msra.gmra.mxu0 %v703_v0  ;;  %1788 = vmatmul.mubr.bf16.vlgmr.msra.gmra.mxu1 %v703_v0 }
 0x23d   :  { %829 = vmatpush1.bf16.msra.mxu0 %v2221_v26  ;;  %1792 = vmatpush3.bf16.msra.mxu1 %v2265_v34 }
 0x23e   :  { %830 = vmatprep.subr.bf16.mxu0 %v2226_v27  ;;  %1793 = vmatprep.subr.bf16.mxu1 %v2092_v1 }
 0x23f   :  { %860 = vmatprep.mubr.bf16.mxu0 %v2093_v2  ;;  %1807 = vmatprep.mubr.msk.bf16.mxu1 %vm2094_vm0, %v2092_v1 }
 0x241   :  { %831 = vmatpush1.bf16.msra.mxu0 %v2236_v29  ;;  %1794 = vmatpush3.bf16.msra.mxu1 %v2284_v37 }
 0x242   :  { %832 = vmatprep.subr.bf16.mxu0 %v2242_v30  ;;  %1795 = vmatprep.subr.bf16.mxu1 %v2092_v1 }
 0x245   :  { %833 = vmatpush1.bf16.msra.mxu0 %v2254_v32  ;;  %1796 = vmatpush3.bf16.msra.mxu1 %v2305_v40 }
 0x246   :  { %834 = vmatprep.subr.bf16.mxu0 %v2260_v33  ;;  %1797 = vmatprep.subr.bf16.mxu1 %v2092_v1 }
 0x249   :  { %835 = vmatpush1.bf16.msra.mxu0 %v2272_v35  ;;  %1798 = vmatpush3.bf16.msra.mxu1 %v2324_v43 }
 0x24a   :  { %836 = vmatprep.subr.bf16.mxu0 %v2278_v36  ;;  %1799 = vmatprep.subr.bf16.mxu1 %v2092_v1 }
 0x24d   :  { %837 = vmatpush1.bf16.msra.mxu0 %v2293_v38  ;;  %1800 = vmatpush3.bf16.msra.mxu1 %v2343_v46 }
 0x24e   :  { %838 = vmatprep.subr.bf16.mxu0 %v2299_v39  ;;  %1801 = vmatprep.subr.bf16.mxu1 %v2092_v1 }
 0x251   :  { %839 = vmatpush1.bf16.msra.mxu0 %v2312_v41  ;;  %1802 = vmatpush3.bf16.msra.mxu1 %v2357_v48 }
 0x252   :  { %840 = vmatprep.subr.bf16.mxu0 %v2318_v42  ;;  %1803 = vmatprep.subr.bf16.mxu1 %v2092_v1 }
 0x255   :  { %841 = vmatpush1.bf16.msra.mxu0 %v2331_v44  ;;  %1804 = vmatpush3.bf16.msra.mxu1 %v2365_v49 }
 0x256   :  { %842 = vmatprep.subr.bf16.mxu0 %v2337_v45  ;;  %1805 = vmatprep.subr.bf16.mxu1 %v2092_v1 }
 0x259   :  { %843 = vmatpush1.bf16.msra.mxu0 %v2350_v47  ;;  %1806 = vmatpush3.bf16.msra.mxu1 %v2376_v50 }
 0x25a   :  { %951 = vmatprep.subr.bf16.mxu0 %v2209_v23  ;;  %1811 = vmatprep.subr.bf16.mxu1 %v2092_v1 }
 0x2fc   :  { %v739_v3 = vpop.f32.mrf.mxu0  ;;  %v780_v4 = vpop.f32.mrf.mxu1 }
 0x2fd   :  { %v787_v5 = vrot.slane %v739_v3, 4  ;;  %v806_v22 = vadd.f32 %v2421_v53, %v780_v4  ;;  %v821_v4 = vld [vmem:[#allocation2 + $0x28] sm:$0xc0] }
 0x2fe   :  { %v741_v7 = vpop.f32.mrf.mxu0  ;;  %v1789_v8 = vpop.f32.mrf.mxu1 }
 0x2ff   :  { %v789_v9 = vadd.f32 %v787_v5, %v698_v6  ;;  %v797_v13 = vrot.slane %v741_v7, 4  ;;  %v808_v25 = vrot.slane %v806_v22, 4 }
 0x300   :  { %v743_v10 = vpop.f32.mrf.mxu0  ;;  %v783_v11 = vpop.f32.mrf.mxu1 }
 0x301   :  { %v1600_v12 = vmul.f32 -1.442695, %v789_v9  ;;  %v799_v17 = vadd.f32 %v797_v13, %v699_v16 }
 0x302   :  { %v744_v14 = vpop.f32.mrf.mxu0  ;;  %v1790_v15 = vpop.f32.mrf.mxu1 }
 0x303   :  { %2007 = vpow2.f32 %v1600_v12  ;;  %v1601_v18 = vmul.f32 -1.442695, %v799_v17  ;;  %v822_v14 = vld [vmem:[#allocation2 + $0x10] sm:$0xc0] }
 0x305   :  { %2009 = vpow2.f32 %v1601_v18 }
 0x310   :  { %v2008_v19 = vpop.eup %2007 }
 0x311   :  { %v793_v20 = vadd.f32 1.0, %v2008_v19 }
 0x312   :  { %v2010_v21 = vpop.eup %2009 }
 0x313   :  { %2011 = vrcp.f32 %v793_v20  ;;  %v803_v24 = vadd.f32 1.0, %v2010_v21 }
 0x315   :  { %2013 = vrcp.f32 %v803_v24 }
 0x320   :  { %v2012_v28 = vpop.eup %2011 }
 0x321   :  { %v810_v31 = vmul.f32 %v2012_v28, %v808_v25  ;;  %v823_v28 = vld [vmem:[#allocation2 + $0x8] sm:$0xc0] }
 0x322   :  { %v2014_v54 = vpop.eup %2013 }
 0x323   :  { %v811_v52 = vadd.f32 %v810_v31, %v700_v51  ;;  %v813_v55 = vsub.f32 1.0, %v2014_v54  ;;  %v818_v59 = vmul.f32 %v2014_v54, %v816_v56 }
 0x325   :  { %2015 = vtanh.f32 %v811_v52 }
 0x332   :  { %v2016_v57 = vpop.eup %2015 }
 0x333   :  { %v814_v58 = vmul.f32 %v2016_v57, %v813_v55 }
 0x335   :  { %v2508_v60 = vadd.f32 %v818_v59, %v814_v58 }
 0x337   :  { %820 = vst [vmem:[#allocation3] sm:$0x30] %v2508_v60  ;;  %v824_v61 = vpack.c.bf16 %v2508_v60, %v2508_v60  ;;  %v939_v54 = vrot.slane %v2508_v60, 6  ;;  %v944_v60 = vld [vmem:[#allocation2] sm:$0x3] }
 0x339   :  { %v826_v63 = vrot.slane %v824_v61, 2 }
 0x33b   :  { %861 = vmatmul.mubr.bf16.vlgmr.msra.gmra.mxu0 %v826_v63  ;;  %1808 = vmatmul.mubr.bf16.vlgmr.msra.gmra.mxu1 %v826_v63 }
 0x33c   :  { %952 = vmatpush1.bf16.msra.mxu0 %v2221_v26  ;;  %1812 = vmatpush3.bf16.msra.mxu1 %v2265_v34 }
 0x33d   :  { %953 = vmatprep.subr.bf16.mxu0 %v2226_v27  ;;  %1813 = vmatprep.subr.bf16.mxu1 %v2092_v1 }
 0x33e   :  { %983 = vmatprep.mubr.bf16.mxu0 %v2093_v2  ;;  %1827 = vmatprep.mubr.msk.bf16.mxu1 %vm2094_vm0, %v2092_v1 }
 0x340   :  { %954 = vmatpush1.bf16.msra.mxu0 %v2236_v29  ;;  %1814 = vmatpush3.bf16.msra.mxu1 %v2284_v37 }
 0x341   :  { %955 = vmatprep.subr.bf16.mxu0 %v2242_v30  ;;  %1815 = vmatprep.subr.bf16.mxu1 %v2092_v1 }
 0x344   :  { %956 = vmatpush1.bf16.msra.mxu0 %v2254_v32  ;;  %1816 = vmatpush3.bf16.msra.mxu1 %v2305_v40 }
 0x345   :  { %957 = vmatprep.subr.bf16.mxu0 %v2260_v33  ;;  %1817 = vmatprep.subr.bf16.mxu1 %v2092_v1 }
 0x348   :  { %958 = vmatpush1.bf16.msra.mxu0 %v2272_v35  ;;  %1818 = vmatpush3.bf16.msra.mxu1 %v2324_v43 }
 0x349   :  { %959 = vmatprep.subr.bf16.mxu0 %v2278_v36  ;;  %1819 = vmatprep.subr.bf16.mxu1 %v2092_v1 }
 0x34c   :  { %960 = vmatpush1.bf16.msra.mxu0 %v2293_v38  ;;  %1820 = vmatpush3.bf16.msra.mxu1 %v2343_v46 }
 0x34d   :  { %961 = vmatprep.subr.bf16.mxu0 %v2299_v39  ;;  %1821 = vmatprep.subr.bf16.mxu1 %v2092_v1 }
 0x350   :  { %962 = vmatpush1.bf16.msra.mxu0 %v2312_v41  ;;  %1822 = vmatpush3.bf16.msra.mxu1 %v2357_v48 }
 0x351   :  { %963 = vmatprep.subr.bf16.mxu0 %v2318_v42  ;;  %1823 = vmatprep.subr.bf16.mxu1 %v2092_v1 }
 0x354   :  { %964 = vmatpush1.bf16.msra.mxu0 %v2331_v44  ;;  %1824 = vmatpush3.bf16.msra.mxu1 %v2365_v49 }
 0x355   :  { %965 = vmatprep.subr.bf16.mxu0 %v2337_v45  ;;  %1825 = vmatprep.subr.bf16.mxu1 %v2092_v1 }
 0x358   :  { %966 = vmatpush1.bf16.msra.mxu0 %v2350_v47  ;;  %1826 = vmatpush3.bf16.msra.mxu1 %v2376_v50 }
 0x359   :  { %1062 = vmatprep.subr.bf16.mxu0 %v2209_v23  ;;  %1831 = vmatprep.subr.bf16.mxu1 %v2092_v1 }
 0x3fb   :  { %v862_v62 = vpop.f32.mrf.mxu0  ;;  %v903_v0 = vpop.f32.mrf.mxu1 }
 0x3fc   :  { %v910_v3 = vrot.slane %v862_v62, 2  ;;  %v929_v20 = vadd.f32 %v2421_v53, %v903_v0 }
 0x3fd   :  { %v864_v5 = vpop.f32.mrf.mxu0  ;;  %v1809_v6 = vpop.f32.mrf.mxu1 }
 0x3fe   :  { %v912_v7 = vadd.f32 %v910_v3, %v821_v4  ;;  %v920_v11 = vrot.slane %v864_v5, 2  ;;  %v931_v22 = vrot.slane %v929_v20, 2 }
 0x3ff   :  { %v866_v8 = vpop.f32.mrf.mxu0  ;;  %v906_v9 = vpop.f32.mrf.mxu1 }
 0x400   :  { %v1602_v10 = vmul.f32 -1.442695, %v912_v7  ;;  %v922_v15 = vadd.f32 %v920_v11, %v822_v14  ;;  %v945_v8 = vld [vmem:[#allocation2 + $0x18] sm:$0x3] }
 0x401   :  { %v867_v12 = vpop.f32.mrf.mxu0  ;;  %v1810_v13 = vpop.f32.mrf.mxu1 }
 0x402   :  { %2017 = vpow2.f32 %v1602_v10  ;;  %v1603_v16 = vmul.f32 -1.442695, %v922_v15 }
 0x404   :  { %2019 = vpow2.f32 %v1603_v16 }
 0x40f   :  { %v2018_v17 = vpop.eup %2017 }
 0x410   :  { %v916_v18 = vadd.f32 1.0, %v2018_v17 }
 0x411   :  { %v2020_v19 = vpop.eup %2019 }
 0x412   :  { %2021 = vrcp.f32 %v916_v18  ;;  %v926_v21 = vadd.f32 1.0, %v2020_v19  ;;  %v946_v19 = vld [vmem:[#allocation2 + $0x20] sm:$0x3] }
 0x414   :  { %2023 = vrcp.f32 %v926_v21 }
 0x41f   :  { %v2022_v24 = vpop.eup %2021 }
 0x420   :  { %v933_v25 = vmul.f32 %v2022_v24, %v931_v22 }
 0x421   :  { %v2024_v51 = vpop.eup %2023 }
 0x422   :  { %v934_v31 = vadd.f32 %v933_v25, %v823_v28  ;;  %v936_v52 = vsub.f32 1.0, %v2024_v51  ;;  %v941_v57 = vmul.f32 %v2024_v51, %v939_v54 }
 0x424   :  { %2025 = vtanh.f32 %v934_v31 }
 0x431   :  { %v2026_v55 = vpop.eup %2025 }
 0x432   :  { %v937_v56 = vmul.f32 %v2026_v55, %v936_v52 }
 0x434   :  { %v2550_v58 = vadd.f32 %v941_v57, %v937_v56  ;;  %v1060_v56 = vld [vmem:[#allocation2 + $0x20] sm:$0xc] }
 0x436   :  { %943 = vst [vmem:[#allocation3] sm:$0xc0] %v2550_v58  ;;  %v947_v59 = vpack.c.bf16 %v2550_v58, %v2550_v58  ;;  %v1053_v24 = vrot.slane %v2550_v58, 6 }
 0x438   :  { %v949_v61 = vrot.slane %v947_v59, 3 }
 0x43a   :  { %984 = vmatmul.mubr.bf16.vlgmr.msra.gmra.mxu0 %v949_v61  ;;  %1828 = vmatmul.mubr.bf16.vlgmr.msra.gmra.mxu1 %v949_v61 }
 0x43b   :  { %1063 = vmatpush1.bf16.msra.mxu0 %v2221_v26  ;;  %1832 = vmatpush3.bf16.msra.mxu1 %v2265_v34 }
 0x43c   :  { %1064 = vmatprep.subr.bf16.mxu0 %v2226_v27  ;;  %1833 = vmatprep.subr.bf16.mxu1 %v2092_v1 }
 0x43d   :  { %1094 = vmatprep.mubr.bf16.mxu0 %v2093_v2  ;;  %1847 = vmatprep.mubr.msk.bf16.mxu1 %vm2094_vm0, %v2092_v1 }
 0x43f   :  { %1065 = vmatpush1.bf16.msra.mxu0 %v2236_v29  ;;  %1834 = vmatpush3.bf16.msra.mxu1 %v2284_v37 }
 0x440   :  { %1066 = vmatprep.subr.bf16.mxu0 %v2242_v30  ;;  %1835 = vmatprep.subr.bf16.mxu1 %v2092_v1 }
 0x443   :  { %1067 = vmatpush1.bf16.msra.mxu0 %v2254_v32  ;;  %1836 = vmatpush3.bf16.msra.mxu1 %v2305_v40 }
 0x444   :  { %1068 = vmatprep.subr.bf16.mxu0 %v2260_v33  ;;  %1837 = vmatprep.subr.bf16.mxu1 %v2092_v1 }
 0x447   :  { %1069 = vmatpush1.bf16.msra.mxu0 %v2272_v35  ;;  %1838 = vmatpush3.bf16.msra.mxu1 %v2324_v43 }
 0x448   :  { %1070 = vmatprep.subr.bf16.mxu0 %v2278_v36  ;;  %1839 = vmatprep.subr.bf16.mxu1 %v2092_v1 }
 0x44b   :  { %1071 = vmatpush1.bf16.msra.mxu0 %v2293_v38  ;;  %1840 = vmatpush3.bf16.msra.mxu1 %v2343_v46 }
 0x44c   :  { %1072 = vmatprep.subr.bf16.mxu0 %v2299_v39  ;;  %1841 = vmatprep.subr.bf16.mxu1 %v2092_v1 }
 0x44f   :  { %1073 = vmatpush1.bf16.msra.mxu0 %v2312_v41  ;;  %1842 = vmatpush3.bf16.msra.mxu1 %v2357_v48 }
 0x450   :  { %1074 = vmatprep.subr.bf16.mxu0 %v2318_v42  ;;  %1843 = vmatprep.subr.bf16.mxu1 %v2092_v1 }
 0x453   :  { %1075 = vmatpush1.bf16.msra.mxu0 %v2331_v44  ;;  %1844 = vmatpush3.bf16.msra.mxu1 %v2365_v49 }
 0x454   :  { %1076 = vmatprep.subr.bf16.mxu0 %v2337_v45  ;;  %1845 = vmatprep.subr.bf16.mxu1 %v2092_v1 }
 0x457   :  { %1077 = vmatpush1.bf16.msra.mxu0 %v2350_v47  ;;  %1846 = vmatpush3.bf16.msra.mxu1 %v2376_v50 }
 0x458   :  { %1185 = vmatprep.subr.bf16.mxu0 %v2209_v23  ;;  %1851 = vmatprep.subr.bf16.mxu1 %v2092_v1 }
 0x4fa   :  { %v985_v63 = vpop.f32.mrf.mxu0  ;;  %v1026_v62 = vpop.f32.mrf.mxu1 }
 0x4fb   :  { %v1032_v0 = vadd.f32 %v985_v63, %v944_v60  ;;  %v1046_v16 = vadd.f32 %v2421_v53, %v1026_v62 }
 0x4fc   :  { %v987_v3 = vpop.f32.mrf.mxu0  ;;  %v1829_v4 = vpop.f32.mrf.mxu1 }
 0x4fd   :  { %v1604_v5 = vmul.f32 -1.442695, %v1032_v0  ;;  %v1039_v11 = vadd.f32 %v987_v3, %v945_v8  ;;  %v2071_v8 = vld [vmem:[%s2776_s2 + $0x90] ss:$12 sps:$4 sm:$0xff]  }
 0x4fe   :  { %v989_v6 = vpop.f32.mrf.mxu0  ;;  %v1029_v7 = vpop.f32.mrf.mxu1 }
 0x4ff   :  { %2027 = vpow2.f32 %v1604_v5  ;;  %v1605_v12 = vmul.f32 -1.442695, %v1039_v11  ;;  %v2068_v5 = vld [vmem:[%s2776_s2 + $0xa8] ss:$12 sps:$4 sm:$0xff]   ;;  %v2069_v6 = vld [vmem:[%s2776_s2 + $0xb0] ss:$12 sps:$4 sm:$0xff]  }
 0x500   :  { %v990_v9 = vpop.f32.mrf.mxu0  ;;  %v1830_v10 = vpop.f32.mrf.mxu1  ;;  %v2070_v7 = vld [vmem:[%s2776_s2 + $0x94] ss:$12 sps:$4 sm:$0xff]  }
 0x501   :  { %2029 = vpow2.f32 %v1605_v12  ;;  %v2072_v9 = vld [vmem:[%s2776_s2 + $0x98] ss:$12 sps:$4 sm:$0xff]   ;;  %v2073_v10 = vld [vmem:[%s2776_s2 + $0x7c] ss:$12 sps:$4 sm:$0xff]   ;;  %v2075_v11 = vld [vmem:[%s2776_s2 + $0x80] ss:$12 sps:$4 sm:$0xff]  }
 0x502   :  { %v2076_v12 = vld [vmem:[%s2776_s2 + $0x64] ss:$12 sps:$4 sm:$0xff]  }
 0x50c   :  { %v2028_v13 = vpop.eup %2027 }
 0x50d   :  { %v1036_v23 = vadd.f32 1.0, %v2028_v13  ;;  %v2077_v13 = vld [vmem:[%s2776_s2 + $0x60] ss:$12 sps:$4 sm:$0xff]  }
 0x50e   :  { %v2030_v14 = vpop.eup %2029 }
 0x50f   :  { %2031 = vrcp.f32 %v1036_v23  ;;  %v1043_v15 = vadd.f32 1.0, %v2030_v14  ;;  %v2078_v23 = vld [vmem:[%s2776_s2 + $0x68] ss:$12 sps:$4 sm:$0xff]   ;;  %v2079_v14 = vld [vmem:[%s2776_s2 + $0x4c] ss:$12 sps:$4 sm:$0xff]  }
 0x511   :  { %2033 = vrcp.f32 %v1043_v15  ;;  %v2080_v15 = vld [vmem:[%s2776_s2 + $0x48] ss:$12 sps:$4 sm:$0xff]  }
 0x51c   :  { %v2032_v17 = vpop.eup %2031 }
 0x51d   :  { %v1047_v18 = vmul.f32 %v2032_v17, %v1046_v16  ;;  %v2081_v16 = vld [vmem:[%s2776_s2 + $0x50] ss:$12 sps:$4 sm:$0xff]   ;;  %v2082_v17 = vld [vmem:[%s2776_s2 + $0x34] ss:$12 sps:$4 sm:$0xff]  }
 0x51e   :  { %v2034_v21 = vpop.eup %2033 }
 0x51f   :  { %v1048_v20 = vadd.f32 %v1047_v18, %v946_v19  ;;  %v1050_v22 = vsub.f32 1.0, %v2034_v21  ;;  %v1055_v31 = vmul.f32 %v2034_v21, %v1053_v24  ;;  %v2083_v18 = vld [vmem:[%s2776_s2 + $0x30] ss:$12 sps:$4 sm:$0xff]   ;;  %v2084_v19 = vld [vmem:[%s2776_s2 + $0x38] ss:$12 sps:$4 sm:$0xff]  }
 0x520   :  { %v2086_v21 = vld [vmem:[%s2776_s2 + $0x18] ss:$12 sps:$4 sm:$0xff]  }
 0x521   :  { %2035 = vtanh.f32 %v1048_v20  ;;  %v2085_v20 = vld [vmem:[%s2776_s2 + $0x1c] ss:$12 sps:$4 sm:$0xff]   ;;  %v2088_v24 = vld [vmem:[%s2776_s2 + $0x4] ss:$12 sps:$4 sm:$0xff]  }
 0x52e   :  { %v2036_v25 = vpop.eup %2035 }
 0x52f   :  { %v1051_v28 = vmul.f32 %v2036_v25, %v1050_v22  ;;  %v2087_v22 = vld [vmem:[%s2776_s2 + $0x20] ss:$12 sps:$4 sm:$0xff]  }
 0x530   :  { %v2089_v25 = vld [vmem:[%s2776_s2] ss:$12 sps:$4 sm:$0xff]  }
 0x531   :  { %v2592_v51 = vadd.f32 %v1055_v31, %v1051_v28  ;;  %v2090_v28 = vld [vmem:[%s2776_s2 + $0x8] ss:$12 sps:$4 sm:$0xff]  }
 0x533   :  { %1057 = vst [vmem:[#allocation3 + $0x8] sm:$0x3] %v2592_v51  ;;  %v1061_v52 = vpack.c.bf16 %v2592_v51, %v2592_v51  ;;  %v1173_v61 = vrot.slane %v2592_v51, 6 }
 0x535   :  { %1095 = vmatmul.mubr.bf16.vlgmr.msra.gmra.mxu0 %v1061_v52  ;;  %1848 = vmatmul.mubr.bf16.vlgmr.msra.gmra.mxu1 %v1061_v52 }
 0x536   :  { %1186 = vmatpush1.bf16.msra.mxu0 %v2221_v26  ;;  %1852 = vmatpush3.bf16.msra.mxu1 %v2265_v34  ;;  %v2067_v26 = vld [vmem:[%s2776_s2 + $0xac] ss:$12 sps:$4 sm:$0xff]  }
 0x537   :  { %1187 = vmatprep.subr.bf16.mxu0 %v2226_v27  ;;  %1853 = vmatprep.subr.bf16.mxu1 %v2092_v1 }
 0x538   :  { %1217 = vmatprep.mubr.bf16.mxu0 %v2093_v2  ;;  %1867 = vmatprep.mubr.msk.bf16.mxu1 %vm2094_vm0, %v2092_v1 }
 0x53a   :  { %1188 = vmatpush1.bf16.msra.mxu0 %v2236_v29  ;;  %1854 = vmatpush3.bf16.msra.mxu1 %v2284_v37 }
 0x53b   :  { %1189 = vmatprep.subr.bf16.mxu0 %v2242_v30  ;;  %1855 = vmatprep.subr.bf16.mxu1 %v2092_v1 }
 0x53e   :  { %1190 = vmatpush1.bf16.msra.mxu0 %v2254_v32  ;;  %1856 = vmatpush3.bf16.msra.mxu1 %v2305_v40  ;;  %v1058_v32 = vld [vmem:[#allocation2] sm:$0xc] }
 0x53f   :  { %1191 = vmatprep.subr.bf16.mxu0 %v2260_v33  ;;  %1857 = vmatprep.subr.bf16.mxu1 %v2092_v1 }
 0x542   :  { %1192 = vmatpush1.bf16.msra.mxu0 %v2272_v35  ;;  %1858 = vmatpush3.bf16.msra.mxu1 %v2324_v43 }
 0x543   :  { %1193 = vmatprep.subr.bf16.mxu0 %v2278_v36  ;;  %1859 = vmatprep.subr.bf16.mxu1 %v2092_v1 }
 0x546   :  { %1194 = vmatpush1.bf16.msra.mxu0 %v2293_v38  ;;  %1860 = vmatpush3.bf16.msra.mxu1 %v2343_v46 }
 0x547   :  { %1195 = vmatprep.subr.bf16.mxu0 %v2299_v39  ;;  %1861 = vmatprep.subr.bf16.mxu1 %v2092_v1 }
 0x54a   :  { %1196 = vmatpush1.bf16.msra.mxu0 %v2312_v41  ;;  %1862 = vmatpush3.bf16.msra.mxu1 %v2357_v48 }
 0x54b   :  { %1197 = vmatprep.subr.bf16.mxu0 %v2318_v42  ;;  %1863 = vmatprep.subr.bf16.mxu1 %v2092_v1  ;;  %v1059_v42 = vld [vmem:[#allocation2 + $0x18] sm:$0xc] }
 0x54e   :  { %1198 = vmatpush1.bf16.msra.mxu0 %v2331_v44  ;;  %1864 = vmatpush3.bf16.msra.mxu1 %v2365_v49 }
 0x54f   :  { %1199 = vmatprep.subr.bf16.mxu0 %v2337_v45  ;;  %1865 = vmatprep.subr.bf16.mxu1 %v2092_v1 }
 0x552   :  { %1200 = vmatpush1.bf16.msra.mxu0 %v2350_v47  ;;  %1866 = vmatpush3.bf16.msra.mxu1 %v2376_v50 }
 0x553   :  { %1308 = vmatprep.subr.bf16.mxu0 %v2067_v26  ;;  %1871 = vmatprep.subr.bf16.mxu1 %v2092_v1  ;;  %v1178_v26 = vld [vmem:[#allocation2] sm:$0x30] }
 0x5f5   :  { %v1096_v27 = vpop.f32.mrf.mxu0  ;;  %v1137_v29 = vpop.f32.mrf.mxu1 }
 0x5f6   :  { %v1144_v30 = vrot.slane %v1096_v27, 6  ;;  %v1163_v48 = vadd.f32 %v2421_v53, %v1137_v29 }
 0x5f7   :  { %v1098_v33 = vpop.f32.mrf.mxu0  ;;  %v1849_v34 = vpop.f32.mrf.mxu1 }
 0x5f8   :  { %v1146_v35 = vadd.f32 %v1144_v30, %v1058_v32  ;;  %v1154_v39 = vrot.slane %v1098_v33, 6  ;;  %v1165_v50 = vrot.slane %v1163_v48, 6 }
 0x5f9   :  { %v1100_v36 = vpop.f32.mrf.mxu0  ;;  %v1140_v37 = vpop.f32.mrf.mxu1 }
 0x5fa   :  { %v1606_v38 = vmul.f32 -1.442695, %v1146_v35  ;;  %v1156_v43 = vadd.f32 %v1154_v39, %v1059_v42 }
 0x5fb   :  { %v1101_v40 = vpop.f32.mrf.mxu0  ;;  %v1850_v41 = vpop.f32.mrf.mxu1 }
 0x5fc   :  { %2037 = vpow2.f32 %v1606_v38  ;;  %v1607_v44 = vmul.f32 -1.442695, %v1156_v43  ;;  %v1179_v38 = vld [vmem:[#allocation2 + $0x18] sm:$0x30] }
 0x5fe   :  { %2039 = vpow2.f32 %v1607_v44 }
 0x609   :  { %v2038_v45 = vpop.eup %2037 }
 0x60a   :  { %v1150_v46 = vadd.f32 1.0, %v2038_v45 }
 0x60b   :  { %v2040_v47 = vpop.eup %2039 }
 0x60c   :  { %2041 = vrcp.f32 %v1150_v46  ;;  %v1160_v49 = vadd.f32 1.0, %v2040_v47 }
 0x60e   :  { %2043 = vrcp.f32 %v1160_v49  ;;  %v1180_v49 = vld [vmem:[#allocation2 + $0x20] sm:$0x30] }
 0x619   :  { %v2042_v54 = vpop.eup %2041 }
 0x61a   :  { %v1167_v55 = vmul.f32 %v2042_v54, %v1165_v50 }
 0x61b   :  { %v2044_v58 = vpop.eup %2043 }
 0x61c   :  { %v1168_v57 = vadd.f32 %v1167_v55, %v1060_v56  ;;  %v1170_v59 = vsub.f32 1.0, %v2044_v58  ;;  %v1175_v62 = vmul.f32 %v2044_v58, %v1173_v61 }
 0x61e   :  { %2045 = vtanh.f32 %v1168_v57 }
 0x62b   :  { %v2046_v60 = vpop.eup %2045 }
 0x62c   :  { %v1171_v63 = vmul.f32 %v2046_v60, %v1170_v59 }
 0x62e   :  { %v2636_v0 = vadd.f32 %v1175_v62, %v1171_v63  ;;  %v1979_v63 = vld [vmem:[%s2779_s5 + $0x38] sm:$0xff]   ;;  %v1980_v62 = vld [vmem:[%s2779_s5 + $0x30] sm:$0xff]  }
 0x630   :  { %1177 = vst [vmem:[#allocation3 + $0x8] sm:$0xc] %v2636_v0  ;;  %v1181_v3 = vpack.c.bf16 %v2636_v0, %v2636_v0  ;;  %v1296_v56 = vrot.slane %v2636_v0, 6  ;;  %v1981_v0 = vld [vmem:[%s2779_s5 + $0x28] sm:$0xff]  }
 0x632   :  { %v1183_v4 = vrot.slane %v1181_v3, 1  ;;  %v1982_v3 = vld [vmem:[%s2779_s5 + $0x20] sm:$0xff]  }
 0x634   :  { %1218 = vmatmul.mubr.bf16.vlgmr.msra.gmra.mxu0 %v1183_v4  ;;  %1868 = vmatmul.mubr.bf16.vlgmr.msra.gmra.mxu1 %v1183_v4  ;;  %v1983_v4 = vld [vmem:[%s2779_s5 + $0x18] sm:$0xff]  }
 0x635   :  { %1309 = vmatpush1.bf16.msra.mxu0 %v2068_v5  ;;  %1872 = vmatpush3.bf16.msra.mxu1 %v2069_v6  ;;  %v1984_v5 = vld [vmem:[%s2779_s5 + $0x10] sm:$0xff]   ;;  %v1985_v6 = vld [vmem:[%s2779_s5 + $0x8] sm:$0xff]  }
 0x636   :  { %1310 = vmatprep.subr.bf16.mxu0 %v2070_v7  ;;  %1873 = vmatprep.subr.bf16.mxu1 %v2092_v1  ;;  %v1986_v7 = vld [vmem:[%s2779_s5] sm:$0xff]  }
 0x637   :  { %1340 = vmatprep.mubr.bf16.mxu0 %v2093_v2  ;;  %1887 = vmatprep.mubr.msk.bf16.mxu1 %vm2094_vm0, %v2092_v1  ;;  %v2074_v2 = vld [vmem:[%s2776_s2 + $0x78] ss:$12 sps:$4 sm:$0xff]  }
 0x639   :  { %1311 = vmatpush1.bf16.msra.mxu0 %v2071_v8  ;;  %1874 = vmatpush3.bf16.msra.mxu1 %v2072_v9  ;;  %v12_v8 = vstv %s2780_s6 }
 0x63a   :  { %1312 = vmatprep.subr.bf16.mxu0 %v2073_v10  ;;  %1875 = vmatprep.subr.bf16.mxu1 %v2092_v1  ;;  %13 = vst [vmem:[#allocation4] sm:$0x1] %v12_v8 }
 0x63d   :  { %1313 = vmatpush1.bf16.msra.mxu0 %v2074_v2  ;;  %1876 = vmatpush3.bf16.msra.mxu1 %v2075_v11  ;;  %v1301_v11 = vld [vmem:[#allocation2] sm:$0xc0] }
 0x63e   :  { %1314 = vmatprep.subr.bf16.mxu0 %v2076_v12  ;;  %1877 = vmatprep.subr.bf16.mxu1 %v2092_v1 }
 0x641   :  { %1315 = vmatpush1.bf16.msra.mxu0 %v2077_v13  ;;  %1878 = vmatpush3.bf16.msra.mxu1 %v2078_v23 }
 0x642   :  { %1316 = vmatprep.subr.bf16.mxu0 %v2079_v14  ;;  %1879 = vmatprep.subr.bf16.mxu1 %v2092_v1 }
 0x645   :  { %1317 = vmatpush1.bf16.msra.mxu0 %v2080_v15  ;;  %1880 = vmatpush3.bf16.msra.mxu1 %v2081_v16 }
 0x646   :  { %1318 = vmatprep.subr.bf16.mxu0 %v2082_v17  ;;  %1881 = vmatprep.subr.bf16.mxu1 %v2092_v1 }
 0x649   :  { %1319 = vmatpush1.bf16.msra.mxu0 %v2083_v18  ;;  %1882 = vmatpush3.bf16.msra.mxu1 %v2084_v19 }
 0x64a   :  { %1320 = vmatprep.subr.bf16.mxu0 %v2085_v20  ;;  %1883 = vmatprep.subr.bf16.mxu1 %v2092_v1 }
 0x64d   :  { %1321 = vmatpush1.bf16.msra.mxu0 %v2086_v21  ;;  %1884 = vmatpush3.bf16.msra.mxu1 %v2087_v22 }
 0x64e   :  { %1322 = vmatprep.subr.bf16.mxu0 %v2088_v24  ;;  %1885 = vmatprep.subr.bf16.mxu1 %v2092_v1 }
 0x651   :  { %1323 = vmatpush1.bf16.msra.mxu0 %v2089_v25  ;;  %1886 = vmatpush3.bf16.msra.mxu1 %v2090_v28  ;;  %v2091_v28 = vld [vmem:[%s2778_s4] ss:$0 sm:$0xff] }
 0x652   :  { %1891 = vmatprep.subr.bf16.mxu0 %v2092_v1 }
 0x6f4   :  { %v1219_v31 = vpop.f32.mrf.mxu0  ;;  %v1260_v51 = vpop.f32.mrf.mxu1 }
 0x6f5   :  { %v1267_v52 = vrot.slane %v1219_v31, 4  ;;  %v1286_v44 = vadd.f32 %v2421_v53, %v1260_v51 }
 0x6f6   :  { %v1221_v27 = vpop.f32.mrf.mxu0  ;;  %v1869_v29 = vpop.f32.mrf.mxu1 }
 0x6f7   :  { %v1269_v30 = vadd.f32 %v1267_v52, %v1178_v26  ;;  %v1277_v35 = vrot.slane %v1221_v27, 4  ;;  %v1288_v46 = vrot.slane %v1286_v44, 4  ;;  %v1303_v29 = vld [vmem:[#allocation2 + $0x20] sm:$0xc0] }
 0x6f8   :  { %v1223_v32 = vpop.f32.mrf.mxu0  ;;  %v1263_v33 = vpop.f32.mrf.mxu1 }
 0x6f9   :  { %v1608_v34 = vmul.f32 -1.442695, %v1269_v30  ;;  %v1279_v39 = vadd.f32 %v1277_v35, %v1179_v38 }
 0x6fa   :  { %v1224_v36 = vpop.f32.mrf.mxu0  ;;  %v1870_v37 = vpop.f32.mrf.mxu1 }
 0x6fb   :  { %2047 = vpow2.f32 %v1608_v34  ;;  %v1609_v40 = vmul.f32 -1.442695, %v1279_v39  ;;  %v1424_v39 = vld [vmem:[#allocation3] sm:$0xff] }
 0x6fd   :  { %2049 = vpow2.f32 %v1609_v40 }
 0x708   :  { %v2048_v41 = vpop.eup %2047 }
 0x709   :  { %v1273_v42 = vadd.f32 1.0, %v2048_v41 }
 0x70a   :  { %v2050_v43 = vpop.eup %2049 }
 0x70b   :  { %2051 = vrcp.f32 %v1273_v42  ;;  %v1283_v45 = vadd.f32 1.0, %v2050_v43  ;;  %v1612_v42 = vld [vmem:[#allocation4] ss:$0 sm:$0xff] }
 0x70d   :  { %2053 = vrcp.f32 %v1283_v45 }
 0x718   :  { %v2052_v47 = vpop.eup %2051 }
 0x719   :  { %v1290_v48 = vmul.f32 %v2052_v47, %v1288_v46 }
 0x71a   :  { %v2054_v54 = vpop.eup %2053 }
 0x71b   :  { %v1291_v50 = vadd.f32 %v1290_v48, %v1180_v49  ;;  %v1293_v55 = vsub.f32 1.0, %v2054_v54  ;;  %v1298_v59 = vmul.f32 %v2054_v54, %v1296_v56 }
 0x71d   :  { %2055 = vtanh.f32 %v1291_v50 }
 0x72a   :  { %v2056_v57 = vpop.eup %2055 }
 0x72b   :  { %v1294_v58 = vmul.f32 %v2056_v57, %v1293_v55 }
 0x72d   :  { %v2723_v61 = vadd.f32 %v1298_v59, %v1294_v58 }
 0x72f   :  { %1300 = vst [vmem:[#allocation3 + $0x8] sm:$0x30] %v2723_v61  ;;  %v1304_v53 = vpack.c.bf16 %v2723_v61, %v2723_v61  ;;  %v1419_v33 = vrot.slane %v2723_v61, 6 }
 0x731   :  { %v1306_v60 = vrot.slane %v1304_v53, 2 }
 0x733   :  { %1341 = vmatmul.mubr.bf16.vlgmr.msra.gmra.mxu0 %v1306_v60  ;;  %1888 = vmatmul.mubr.bf16.vlgmr.msra.gmra.mxu1 %v1306_v60 }
 0x734   :  { %1907 = vmatprep.mubr.msk.bf16.mxu0 %vm2094_vm0, %v2092_v1  ;;  %1892 = vmatpush3.bf16.msra.mxu0 %v1979_v63 }
 0x735   :  { %1893 = vmatprep.subr.bf16.mxu0 %v2092_v1 }
 0x738   :  { %1894 = vmatpush3.bf16.msra.mxu0 %v1980_v62 }
 0x739   :  { %1895 = vmatprep.subr.bf16.mxu0 %v2092_v1 }
 0x73c   :  { %1896 = vmatpush3.bf16.msra.mxu0 %v1981_v0 }
 0x73d   :  { %1897 = vmatprep.subr.bf16.mxu0 %v2092_v1 }
 0x740   :  { %1898 = vmatpush3.bf16.msra.mxu0 %v1982_v3 }
 0x741   :  { %1899 = vmatprep.subr.bf16.mxu0 %v2092_v1 }
 0x744   :  { %1900 = vmatpush3.bf16.msra.mxu0 %v1983_v4 }
 0x745   :  { %1901 = vmatprep.subr.bf16.mxu0 %v2092_v1 }
 0x748   :  { %1902 = vmatpush3.bf16.msra.mxu0 %v1984_v5 }
 0x749   :  { %1903 = vmatprep.subr.bf16.mxu0 %v2092_v1 }
 0x74c   :  { %1904 = vmatpush3.bf16.msra.mxu0 %v1985_v6 }
 0x74d   :  { %1905 = vmatprep.subr.bf16.mxu0 %v2092_v1  ;;  %v1302_v1 = vld [vmem:[#allocation2 + $0x18] sm:$0xc0] }
 0x750   :  { %1906 = vmatpush3.bf16.msra.mxu0 %v1986_v7 }
 0x7f3   :  { %v1342_v9 = vpop.f32.mrf.mxu0  ;;  %v1383_v10 = vpop.f32.mrf.mxu1 }
 0x7f4   :  { %v1390_v2 = vrot.slane %v1342_v9, 2  ;;  %v1409_v31 = vadd.f32 %v2091_v28, %v1383_v10 }
 0x7f5   :  { %v1344_v12 = vpop.f32.mrf.mxu0  ;;  %v1889_v13 = vpop.f32.mrf.mxu1 }
 0x7f6   :  { %v1392_v23 = vadd.f32 %v1390_v2, %v1301_v11  ;;  %v1400_v17 = vrot.slane %v1344_v12, 2  ;;  %v1411_v52 = vrot.slane %v1409_v31, 2 }
 0x7f7   :  { %v1346_v14 = vpop.f32.mrf.mxu0  ;;  %v1386_v15 = vpop.f32.mrf.mxu1 }
 0x7f8   :  { %v1610_v16 = vmul.f32 -1.442695, %v1392_v23  ;;  %v1402_v20 = vadd.f32 %v1400_v17, %v1302_v1 }
 0x7f9   :  { %v1347_v18 = vpop.f32.mrf.mxu0  ;;  %v1890_v19 = vpop.f32.mrf.mxu1 }
 0x7fa   :  { %2057 = vpow2.f32 %v1610_v16  ;;  %v1611_v21 = vmul.f32 -1.442695, %v1402_v20 }
 0x7fc   :  { %2059 = vpow2.f32 %v1611_v21 }
 0x807   :  { %v2058_v22 = vpop.eup %2057 }
 0x808   :  { %v1396_v24 = vadd.f32 1.0, %v2058_v22 }
 0x809   :  { %v2060_v25 = vpop.eup %2059 }
 0x80a   :  { %2061 = vrcp.f32 %v1396_v24  ;;  %v1406_v51 = vadd.f32 1.0, %v2060_v25 }
 0x80c   :  { %2063 = vrcp.f32 %v1406_v51 }
 0x817   :  { %v2062_v26 = vpop.eup %2061 }
 0x818   :  { %v1413_v27 = vmul.f32 %v2062_v26, %v1411_v52 }
 0x819   :  { %v2064_v32 = vpop.eup %2063 }
 0x81a   :  { %v1414_v30 = vadd.f32 %v1413_v27, %v1303_v29  ;;  %v1416_v34 = vsub.f32 1.0, %v2064_v32  ;;  %v1421_v37 = vmul.f32 %v2064_v32, %v1419_v33 }
 0x81c   :  { %2065 = vtanh.f32 %v1414_v30 }
 0x829   :  { %v2066_v35 = vpop.eup %2065 }
 0x82a   :  { %v1417_v36 = vmul.f32 %v2066_v35, %v1416_v34 }
 0x82c   :  { %v1422_v38 = vadd.f32 %v1421_v37, %v1417_v36 }
 0x82e   :  { %1423 = vst [vmem:[#allocation3 + $0x8] sm:$0xc0] %v1422_v38 }
 0x835   :  { %v1425_v40 = vld [vmem:[#allocation3 + $0x8] sm:$0xff] }
 0x836   :  { %v1426_v41 = vpack.c.bf16 %v1425_v40, %v1424_v39 }
 0x838   :  { %1908 = vmatmul.mubr.bf16.vlgmr.msra.gmra.mxu0 %v1426_v41 }
 0x8f8   :  { %v1532_v43 = vpop.f32.mrf.mxu0 }
 0x8f9   :  { %v1533_v44 = vadd.f32 %v1612_v42, %v1532_v43 }
 0x8fa   :  { %v1909_v45 = vpop.f32.mrf.mxu0 }
 0x8fb   :  { %1540 = vst.msk [vmem:[%s2781_s7] sm:$0xff] %vm1539_vm1, %v1533_v44 }
 0x8fc   :  { %v1535_v46 = vpop.f32.mrf.mxu0 }
 0x8fd   :  { %v1536_v47 = vadd.f32 %v1612_v42, %v1535_v46 }
 0x8fe   :  { %v1910_v48 = vpop.f32.mrf.mxu0 }
 0x8ff   :  { %1541 = vst.msk [vmem:[%s2781_s7 + $0x8] sm:$0xff] %vm1539_vm1, %v1536_v47 }

</bundles_post_ra>
